<compile_context>
chip_gen: v5e
topology: v5e:2x2
jax: 0.10.0
libtpu: 0.0.40
codegen_flags: <defaults>
</compile_context>

<pallas_src>
import jax
import jax.numpy as jnp
import numpy as np
from jax.experimental import pallas as pl
from jax.experimental.pallas import tpu as pltpu


def _round_up(x, m):
    return ((x + m - 1) // m) * m


def _vmem_capacity_bytes():
    try:
        return int(pltpu.get_tpu_info().vmem_capacity_bytes)
    except Exception:
        return 64 << 20  # conservative (v7x per-TensorCore VMEM)


def _resident_spec(shape, single_buffer):
    """Constant-index (VMEM-resident across all grid steps) BlockSpec."""
    idx = lambda *_: (0,) * len(shape)
    if single_buffer:
        return pl.BlockSpec(shape, idx, pipeline_mode=pl.Buffered(1))
    return pl.BlockSpec(shape, idx)


# --------------------------------------------------------------------------
# Kernels
# --------------------------------------------------------------------------
def _make_resident_kernel(dims_p, n_layers, compute_dtype, precision):
    """All (padded, pre-transposed) weights live in VMEM for the whole call."""

    def kernel(x_ref, b_ref, *rest):
        w_refs = rest[:n_layers]
        out_ref = rest[n_layers]
        h = x_ref[...]
        for li in range(n_layers):
            o_p = dims_p[li + 1]
            acc = jnp.dot(h, w_refs[li][...],
                          preferred_element_type=jnp.float32,
                          precision=precision)
            acc = acc + b_ref[li:li + 1, :o_p]
            if li != n_layers - 1:
                # Cast back so the next MXU pass keeps the fast input dtype.
                h = jnp.maximum(acc, 0.0).astype(compute_dtype)
            else:
                out_ref[...] = acc.astype(out_ref.dtype)

    return kernel


def _make_stream_kernel(dims_p, n_layers, nc, compute_dtype, precision):
    """Weights stay in HBM; output-column chunks are double-buffered via DMA.

    Per layer li the weight arrives pre-chunked as [n_chunks, in_pad, nc].
    """

    def kernel(x_ref, b_ref, *rest):
        w_refs = rest[:n_layers]
        out_ref = rest[n_layers]
        scratch = rest[n_layers + 1:]
        if n_layers > 1:
            wbuf, sem, h_ref = scratch
        else:
            wbuf, sem = scratch
            h_ref = None

        def dma(li, j, slot):
            i_p = dims_p[li]
            return pltpu.make_async_copy(
                w_refs[li].at[j],                       # (i_p, nc) HBM chunk
                wbuf.at[slot, pl.ds(0, i_p), :],        # (i_p, nc) VMEM slot
                sem.at[slot])

        # Flat schedule over (layer, out-chunk); prefetch runs across layer
        # boundaries (weight DMAs never depend on activations).
        schedule = [(li, j)
                    for li in range(n_layers)
                    for j in range(dims_p[li + 1] // nc)]
        dma(*schedule[0], 0).start()

        lhs = None
        for g, (li, j) in enumerate(schedule):
            slot = g & 1
            i_p = dims_p[li]
            last_layer = (li == n_layers - 1)

            if j == 0:
                lhs = x_ref[...] if li == 0 else h_ref[:, :i_p]

            dma(li, j, slot).wait()
            if g + 1 < len(schedule):
                nli, nj = schedule[g + 1]
                dma(nli, nj, 1 - slot).start()

            w_chunk = wbuf[slot, :i_p, :]
            acc = jnp.dot(lhs, w_chunk,
                          preferred_element_type=jnp.float32,
                          precision=precision)
            acc = acc + b_ref[li:li + 1, j * nc:(j + 1) * nc]
            if not last_layer:
                acc = jnp.maximum(acc, 0.0)
                h_ref[:, j * nc:(j + 1) * nc] = acc.astype(h_ref.dtype)
            else:
                out_ref[:, j * nc:(j + 1) * nc] = acc.astype(out_ref.dtype)

    return kernel


# --------------------------------------------------------------------------
# Wrapper
# --------------------------------------------------------------------------
def mlp_forward(x, params, *, batch_tile=512, compute_dtype=None,
                force_stream=False):
    """Fused Pallas MLP forward.

    Args:
      x: [B, input_dim].
      params: list of (W, b) with W: [out, in], b: [out] (PyTorch convention).
      batch_tile: target batch tile (rounded to a multiple of 8).
      compute_dtype: operand dtype for the MXU (default: x.dtype). Pass
        jnp.bfloat16 for ~2-4x matmul throughput (f32 accumulation kept).
      force_stream: force the streaming-weights (HBM) path (for testing).
    """
    if not params:
        raise ValueError("params must contain at least one (W, b) layer")
    B, in_dim = x.shape
    out_dtype = x.dtype
    compute_dtype = jnp.dtype(compute_dtype if compute_dtype is not None
                              else x.dtype)
    csize = compute_dtype.itemsize
    osize = jnp.dtype(out_dtype).itemsize

    # f32 compute -> full-precision MXU emulation (matches PyTorch numerics).
    precision = (jax.lax.Precision.HIGHEST
                 if compute_dtype == jnp.dtype(jnp.float32)
                 else jax.lax.Precision.DEFAULT)

    n_layers = len(params)
    dims = [in_dim] + [w.shape[0] for (w, _) in params]
    dims_p = [_round_up(d, 128) for d in dims]          # lane-dense padding
    out_dim, out_p = dims[-1], dims_p[-1]
    max_out_p = max(dims_p[1:])
    max_dim_p = max(dims_p)

    # ---- batch tiling (sublane-aligned, >=2 grid steps when possible) ----
    B_p = _round_up(B, 8)
    TM = min(_round_up(max(int(batch_tile), 8), 8), B_p)
    B_p = _round_up(B_p, TM)
    if B_p // TM == 1 and TM >= 16:
        TM = _round_up(TM // 2, 8)                      # feed both v7x TCs
        B_p = _round_up(_round_up(B, 8), TM)
    grid = (B_p // TM,)

    # ---- pad / pack parameters ----
    x_p = jnp.zeros((B_p, dims_p[0]), compute_dtype).at[:B, :in_dim].set(
        x.astype(compute_dtype))

    b_packed = jnp.zeros((n_layers, max_out_p), jnp.float32)
    w_list = []
    weight_bytes = 0
    flops = 0
    for li, (w, b) in enumerate(params):
        o, i_ = w.shape
        i_p, o_p = dims_p[li], dims_p[li + 1]
        w_t = jnp.zeros((i_p, o_p), compute_dtype).at[:i_, :o].set(
            jnp.asarray(w, compute_dtype).T)            # pre-transposed [in,out]
        w_list.append(w_t)
        b_packed = b_packed.at[li, :o].set(jnp.asarray(b, jnp.float32))
        weight_bytes += i_p * o_p * csize
        flops += 2 * B_p * i_p * o_p
    bias_bytes = int(b_packed.size) * 4

    # ---- VMEM budget (real device capacity, minus headroom) ----
    vmem_cap = _vmem_capacity_bytes()
    vmem_budget = max(vmem_cap - (8 << 20), 16 << 20)
    act_tiles = 2 * TM * dims_p[0] * csize + 2 * TM * out_p * osize
    inter_bytes = TM * max_dim_p * (4 + csize)          # f32 acc + cast copy
    resident_need = (weight_bytes + bias_bytes + act_tiles + inter_bytes
                     + (2 << 20))
    use_stream = force_stream or resident_need > 0.8 * vmem_budget

    io_bytes = int(x_p.size) * csize + bias_bytes + B_p * out_p * osize

    if use_stream:
        # Streaming-weights path (weights in HBM, chunked over output cols).
        nc = 128
        for cand in (512, 256):
            if all(o % cand == 0 for o in dims_p[1:]):
                nc = cand
                break
        max_in_p = max(dims_p[:-1])
        max_hidden_p = max(dims_p[1:-1]) if n_layers > 1 else 0
        w_stream = [w_list[li]
                    .reshape(dims_p[li], dims_p[li + 1] // nc, nc)
                    .transpose(1, 0, 2)                 # [n_chunks, in_p, nc]
                    for li in range(n_layers)]

        stream_need = (act_tiles + bias_bytes
                       + 2 * max_in_p * nc * csize
                       + TM * max_hidden_p * csize
                       + TM * nc * 4 + (2 << 20))
        vmem_limit = int(min(vmem_budget, max(stream_need + (4 << 20),
                                              32 << 20)))
        bytes_accessed = int(io_bytes + weight_bytes * grid[0])

        kernel = _make_stream_kernel(dims_p, n_layers, nc, compute_dtype,
                                     precision)
        scratch = [pltpu.VMEM((2, max_in_p, nc), compute_dtype),
                   pltpu.SemaphoreType.DMA((2,))]
        if n_layers > 1:
            scratch.append(pltpu.VMEM((TM, max_hidden_p), compute_dtype))

        def _call(single_buffer):
            in_specs = ([pl.BlockSpec((TM, dims_p[0]), lambda i: (i, 0)),
                         _resident_spec((n_layers, max_out_p), single_buffer)]
                        + [pl.BlockSpec(memory_space=pl.ANY)
                           for _ in range(n_layers)])
            return pl.pallas_call(
                kernel,
                out_shape=jax.ShapeDtypeStruct((B_p, out_p), out_dtype),
                grid=grid,
                in_specs=in_specs,
                out_specs=pl.BlockSpec((TM, out_p), lambda i: (i, 0)),
                scratch_shapes=scratch,
                compiler_params=pltpu.CompilerParams(
                    dimension_semantics=("parallel",),
                    vmem_limit_bytes=vmem_limit),
                cost_estimate=pl.CostEstimate(
                    flops=int(flops), transcendentals=0,
                    bytes_accessed=bytes_accessed),
            )(x_p, b_packed, *w_stream)
    else:
        # Fully VMEM-resident weights (single-buffered via Buffered(1)).
        vmem_limit = int(min(vmem_budget, max(resident_need + (4 << 20),
                                              32 << 20)))
        bytes_accessed = int(io_bytes + weight_bytes)

        kernel = _make_resident_kernel(dims_p, n_layers, compute_dtype,
                                       precision)

        def _call(single_buffer):
            in_specs = [pl.BlockSpec((TM, dims_p[0]), lambda i: (i, 0)),
                        _resident_spec((n_layers, max_out_p), single_buffer)]
            for li in range(n_layers):
                in_specs.append(_resident_spec(
                    (dims_p[li], dims_p[li + 1]), single_buffer))
            return pl.pallas_call(
                kernel,
                out_shape=jax.ShapeDtypeStruct((B_p, out_p), out_dtype),
                grid=grid,
                in_specs=in_specs,
                out_specs=pl.BlockSpec((TM, out_p), lambda i: (i, 0)),
                compiler_params=pltpu.CompilerParams(
                    dimension_semantics=("parallel",),
                    vmem_limit_bytes=vmem_limit),
                cost_estimate=pl.CostEstimate(
                    flops=int(flops), transcendentals=0,
                    bytes_accessed=bytes_accessed),
            )(x_p, b_packed, *w_list)

    try:
        out_padded = _call(True)
    except Exception:
        # Fallback if this Pallas build rejects single-buffered BlockSpecs.
        out_padded = _call(False)

    return out_padded[:B, :out_dim]


# --------------------------------------------------------------------------
# Init + reference + self-test
# --------------------------------------------------------------------------
def init_mlp_params(key, input_dim, hidden_dim, output_dim, hidden_depth):
    """Matches MLP.__init__ + weight_init: orthogonal weights, zero biases."""
    ortho = jax.nn.initializers.orthogonal()
    if hidden_depth == 0:
        shapes = [(output_dim, input_dim)]
    else:
        shapes = [(hidden_dim, input_dim)]
        for _ in range(hidden_depth - 1):
            shapes.append((hidden_dim, hidden_dim))
        shapes.append((output_dim, hidden_dim))

    params = []
    keys = jax.random.split(key, len(shapes))
    for k, (out_d, in_d) in zip(keys, shapes):
        w = ortho(k, (out_d, in_d), jnp.float32)   # nn.init.orthogonal_
        b = jnp.zeros((out_d,), jnp.float32)       # bias.data.fill_(0.0)
        params.append((w, b))
    return params


def mlp_reference_np(x, params):
    """Pure numpy f32 reference (PyTorch semantics)."""
    h = np.asarray(x, np.float32)
    for i, (w, b) in enumerate(params):
        h = h @ np.asarray(w, np.float32).T + np.asarray(b, np.float32)
        if i != len(params) - 1:
            h = np.maximum(h, 0.0)
    return h


if __name__ == "__main__":
    key = jax.random.PRNGKey(0)
    k_x, k_p1, k_p2 = jax.random.split(key, 3)

    # Small shapes consistent with MLP(input_dim, hidden_dim, output_dim, depth)
    B, input_dim, hidden_dim, output_dim, hidden_depth = 8, 32, 64, 16, 2
    x = jax.random.normal(k_x, (B, input_dim), dtype=jnp.float32)

    # hidden_depth > 0: resident path and forced streaming path
    params = init_mlp_params(k_p1, input_dim, hidden_dim, output_dim,
                             hidden_depth)
    ref = mlp_reference_np(np.asarray(x), params)

    out = jax.block_until_ready(mlp_forward(x, params))
    np.testing.assert_allclose(np.asarray(out), ref, rtol=1e-4, atol=1e-4)

    out_s = jax.block_until_ready(mlp_forward(x, params, force_stream=True))
    np.testing.assert_allclose(np.asarray(out_s), ref, rtol=1e-4, atol=1e-4)

    # hidden_depth == 0 (single Linear, no activation), both paths
    params0 = init_mlp_params(k_p2, input_dim, hidden_dim, output_dim, 0)
    ref0 = mlp_reference_np(np.asarray(x), params0)
    out0 = jax.block_until_ready(mlp_forward(x, params0))
    np.testing.assert_allclose(np.asarray(out0), ref0, rtol=1e-4, atol=1e-4)
    out0_s = jax.block_until_ready(mlp_forward(x, params0, force_stream=True))
    np.testing.assert_allclose(np.asarray(out0_s), ref0, rtol=1e-4, atol=1e-4)

    # Optional bf16 compute path (fast MXU); loose tolerance, numerics differ.
    out_bf = jax.block_until_ready(
        mlp_forward(x, params, compute_dtype=jnp.bfloat16))
    np.testing.assert_allclose(np.asarray(out_bf, dtype=np.float32), ref,
                               rtol=1e-1, atol=1e-1)

    print("KERNEL_OK")
</pallas_src>

<mosaic_0001>
module attributes {stable_mosaic.version = 11 : i64} {
  func.func @kernel(%arg0: i32, %arg1: memref<8x128xf32, #tpu.memory_space<vmem>>, %arg2: memref<3x128xf32, #tpu.memory_space<vmem>>, %arg3: memref<128x128xf32, #tpu.memory_space<vmem>>, %arg4: memref<128x128xf32, #tpu.memory_space<vmem>>, %arg5: memref<128x128xf32, #tpu.memory_space<vmem>>, %arg6: memref<8x128xf32, #tpu.memory_space<vmem>>) attributes {dimension_semantics = [#tpu.dimension_semantics<parallel>], iteration_bounds = array<i64: 1>, scalar_prefetch = 0 : i64, scratch_operands = 0 : i64, tpu.core_type = #tpu.core_type<tc>, window_params = [{transform_indices = @transform_0, window_bounds = array<i64: 8, 128>}, {pipeline_mode = #tpu.pipeline_mode<synchronous>, transform_indices = @transform_1, window_bounds = array<i64: 3, 128>}, {pipeline_mode = #tpu.pipeline_mode<synchronous>, transform_indices = @transform_2, window_bounds = array<i64: 128, 128>}, {pipeline_mode = #tpu.pipeline_mode<synchronous>, transform_indices = @transform_3, window_bounds = array<i64: 128, 128>}, {pipeline_mode = #tpu.pipeline_mode<synchronous>, transform_indices = @transform_4, window_bounds = array<i64: 128, 128>}, {transform_indices = @transform_5, window_bounds = array<i64: 8, 128>}]} {
    %c0 = arith.constant 0 : index
    %c0_0 = arith.constant 0 : index
    %0 = vector.load %arg1[%c0, %c0_0] : memref<8x128xf32, #tpu.memory_space<vmem>>, vector<8x128xf32>
    %c0_1 = arith.constant 0 : index
    %c0_2 = arith.constant 0 : index
    %1 = vector.load %arg3[%c0_1, %c0_2] : memref<128x128xf32, #tpu.memory_space<vmem>>, vector<128x128xf32>
    %cst = arith.constant dense<0.000000e+00> : vector<8x128xf32>
    %2 = tpu.matmul %0, %1, %cst {dimension_numbers = #tpu.dot_dimension_numbers<[1], [0], [0], [1], [0, 0, 1, 1], [], []>, precision = #tpu.contract_precision<fp32>} : vector<8x128xf32>, vector<128x128xf32>, vector<8x128xf32> -> vector<8x128xf32>
    %c0_3 = arith.constant 0 : index
    %c0_4 = arith.constant 0 : index
    %3 = vector.load %arg2[%c0_3, %c0_4] : memref<3x128xf32, #tpu.memory_space<vmem>>, vector<1x128xf32>
    %4 = vector.broadcast %3 : vector<1x128xf32> to vector<8x128xf32>
    %5 = arith.addf %2, %4 : vector<8x128xf32>
    %cst_5 = arith.constant 0.000000e+00 : f32
    %6 = vector.broadcast %cst_5 : f32 to vector<8x128xf32>
    %7 = arith.maximumf %5, %6 : vector<8x128xf32>
    %c0_6 = arith.constant 0 : index
    %c0_7 = arith.constant 0 : index
    %8 = vector.load %arg4[%c0_6, %c0_7] : memref<128x128xf32, #tpu.memory_space<vmem>>, vector<128x128xf32>
    %cst_8 = arith.constant dense<0.000000e+00> : vector<8x128xf32>
    %9 = tpu.matmul %7, %8, %cst_8 {dimension_numbers = #tpu.dot_dimension_numbers<[1], [0], [0], [1], [0, 0, 1, 1], [], []>, precision = #tpu.contract_precision<fp32>} : vector<8x128xf32>, vector<128x128xf32>, vector<8x128xf32> -> vector<8x128xf32>
    %c1 = arith.constant 1 : index
    %c0_9 = arith.constant 0 : index
    %10 = vector.load %arg2[%c1, %c0_9] : memref<3x128xf32, #tpu.memory_space<vmem>>, vector<1x128xf32>
    %11 = vector.broadcast %10 : vector<1x128xf32> to vector<8x128xf32>
    %12 = arith.addf %9, %11 : vector<8x128xf32>
    %cst_10 = arith.constant 0.000000e+00 : f32
    %13 = vector.broadcast %cst_10 : f32 to vector<8x128xf32>
    %14 = arith.maximumf %12, %13 : vector<8x128xf32>
    %c0_11 = arith.constant 0 : index
    %c0_12 = arith.constant 0 : index
    %15 = vector.load %arg5[%c0_11, %c0_12] : memref<128x128xf32, #tpu.memory_space<vmem>>, vector<128x128xf32>
    %cst_13 = arith.constant dense<0.000000e+00> : vector<8x128xf32>
    %16 = tpu.matmul %14, %15, %cst_13 {dimension_numbers = #tpu.dot_dimension_numbers<[1], [0], [0], [1], [0, 0, 1, 1], [], []>, precision = #tpu.contract_precision<fp32>} : vector<8x128xf32>, vector<128x128xf32>, vector<8x128xf32> -> vector<8x128xf32>
    %c2 = arith.constant 2 : index
    %c0_14 = arith.constant 0 : index
    %17 = vector.load %arg2[%c2, %c0_14] : memref<3x128xf32, #tpu.memory_space<vmem>>, vector<1x128xf32>
    %18 = vector.broadcast %17 : vector<1x128xf32> to vector<8x128xf32>
    %19 = arith.addf %16, %18 : vector<8x128xf32>
    %c0_15 = arith.constant 0 : index
    %c0_16 = arith.constant 0 : index
    %20 = vector.load %arg6[%c0_15, %c0_16] : memref<8x128xf32, #tpu.memory_space<vmem>>, vector<8x128xf32>
    tpu.vector_store %arg6[%c0_15, %c0_16], %19 {strides = array<i32>} : memref<8x128xf32, #tpu.memory_space<vmem>>, vector<8x128xf32>,
    return
  }
  func.func @transform_0(%arg0: i32) -> (i32, i32) {
    %c0_i32 = arith.constant 0 : i32
    %c0_i32_0 = arith.constant 0 : i32
    return %arg0, %c0_i32 : i32, i32
  }
  func.func @transform_1(%arg0: i32) -> (i32, i32) {
    %c0_i32 = arith.constant 0 : i32
    %c0_i32_0 = arith.constant 0 : i32
    %c0_i32_1 = arith.constant 0 : i32
    return %c0_i32, %c0_i32_0 : i32, i32
  }
  func.func @transform_2(%arg0: i32) -> (i32, i32) {
    %c0_i32 = arith.constant 0 : i32
    %c0_i32_0 = arith.constant 0 : i32
    %c0_i32_1 = arith.constant 0 : i32
    return %c0_i32, %c0_i32_0 : i32, i32
  }
  func.func @transform_3(%arg0: i32) -> (i32, i32) {
    %c0_i32 = arith.constant 0 : i32
    %c0_i32_0 = arith.constant 0 : i32
    %c0_i32_1 = arith.constant 0 : i32
    return %c0_i32, %c0_i32_0 : i32, i32
  }
  func.func @transform_4(%arg0: i32) -> (i32, i32) {
    %c0_i32 = arith.constant 0 : i32
    %c0_i32_0 = arith.constant 0 : i32
    %c0_i32_1 = arith.constant 0 : i32
    return %c0_i32, %c0_i32_0 : i32, i32
  }
  func.func @transform_5(%arg0: i32) -> (i32, i32) {
    %c0_i32 = arith.constant 0 : i32
    %c0_i32_0 = arith.constant 0 : i32
    return %arg0, %c0_i32 : i32, i32
  }
}

module attributes {stable_mosaic.version = 11 : i64} {
  func.func @kernel(%arg0: i32, %arg1: memref<8x128xf32, #tpu.memory_space<vmem>>, %arg2: memref<3x128xf32, #tpu.memory_space<vmem>>, %arg3: memref<128x128xf32, #tpu.memory_space<vmem>>, %arg4: memref<128x128xf32, #tpu.memory_space<vmem>>, %arg5: memref<128x128xf32, #tpu.memory_space<vmem>>, %arg6: memref<8x128xf32, #tpu.memory_space<vmem>>) attributes {dimension_semantics = [#tpu.dimension_semantics<parallel>], iteration_bounds = array<i64: 1>, scalar_prefetch = 0 : i64, scratch_operands = 0 : i64, tpu.core_type = #tpu.core_type<tc>, window_params = [{transform_indices = @transform_0, window_bounds = array<i64: 8, 128>}, {pipeline_mode = #tpu.pipeline_mode<synchronous>, transform_indices = @transform_1, window_bounds = array<i64: 3, 128>}, {pipeline_mode = #tpu.pipeline_mode<synchronous>, transform_indices = @transform_2, window_bounds = array<i64: 128, 128>}, {pipeline_mode = #tpu.pipeline_mode<synchronous>, transform_indices = @transform_3, window_bounds = array<i64: 128, 128>}, {pipeline_mode = #tpu.pipeline_mode<synchronous>, transform_indices = @transform_4, window_bounds = array<i64: 128, 128>}, {transform_indices = @transform_5, window_bounds = array<i64: 8, 128>}]} {
    %c0 = arith.constant 0 : index
    %c0_0 = arith.constant 0 : index
    %0 = vector.load %arg1[%c0, %c0_0] : memref<8x128xf32, #tpu.memory_space<vmem>>, vector<8x128xf32>
    %c0_1 = arith.constant 0 : index
    %c0_2 = arith.constant 0 : index
    %1 = vector.load %arg3[%c0_1, %c0_2] : memref<128x128xf32, #tpu.memory_space<vmem>>, vector<128x128xf32>
    %cst = arith.constant dense<0.000000e+00> : vector<8x128xf32>
    %2 = tpu.matmul %0, %1, %cst {dimension_numbers = #tpu.dot_dimension_numbers<[1], [0], [0], [1], [0, 0, 1, 1], [], []>, precision = #tpu.contract_precision<fp32>} : vector<8x128xf32>, vector<128x128xf32>, vector<8x128xf32> -> vector<8x128xf32>
    %c0_3 = arith.constant 0 : index
    %c0_4 = arith.constant 0 : index
    %3 = vector.load %arg2[%c0_3, %c0_4] : memref<3x128xf32, #tpu.memory_space<vmem>>, vector<1x128xf32>
    %4 = vector.broadcast %3 : vector<1x128xf32> to vector<8x128xf32>
    %5 = arith.addf %2, %4 : vector<8x128xf32>
    %cst_5 = arith.constant 0.000000e+00 : f32
    %6 = vector.broadcast %cst_5 : f32 to vector<8x128xf32>
    %7 = arith.maximumf %5, %6 : vector<8x128xf32>
    %c0_6 = arith.constant 0 : index
    %c0_7 = arith.constant 0 : index
    %8 = vector.load %arg4[%c0_6, %c0_7] : memref<128x128xf32, #tpu.memory_space<vmem>>, vector<128x128xf32>
    %cst_8 = arith.constant dense<0.000000e+00> : vector<8x128xf32>
    %9 = tpu.matmul %7, %8, %cst_8 {dimension_numbers = #tpu.dot_dimension_numbers<[1], [0], [0], [1], [0, 0, 1, 1], [], []>, precision = #tpu.contract_precision<fp32>} : vector<8x128xf32>, vector<128x128xf32>, vector<8x128xf32> -> vector<8x128xf32>
    %c1 = arith.constant 1 : index
    %c0_9 = arith.constant 0 : index
    %10 = vector.load %arg2[%c1, %c0_9] : memref<3x128xf32, #tpu.memory_space<vmem>>, vector<1x128xf32>
    %11 = vector.broadcast %10 : vector<1x128xf32> to vector<8x128xf32>
    %12 = arith.addf %9, %11 : vector<8x128xf32>
    %cst_10 = arith.constant 0.000000e+00 : f32
    %13 = vector.broadcast %cst_10 : f32 to vector<8x128xf32>
    %14 = arith.maximumf %12, %13 : vector<8x128xf32>
    %c0_11 = arith.constant 0 : index
    %c0_12 = arith.constant 0 : index
    %15 = vector.load %arg5[%c0_11, %c0_12] : memref<128x128xf32, #tpu.memory_space<vmem>>, vector<128x128xf32>
    %cst_13 = arith.constant dense<0.000000e+00> : vector<8x128xf32>
    %16 = tpu.matmul %14, %15, %cst_13 {dimension_numbers = #tpu.dot_dimension_numbers<[1], [0], [0], [1], [0, 0, 1, 1], [], []>, precision = #tpu.contract_precision<fp32>} : vector<8x128xf32>, vector<128x128xf32>, vector<8x128xf32> -> vector<8x128xf32>
    %c2 = arith.constant 2 : index
    %c0_14 = arith.constant 0 : index
    %17 = vector.load %arg2[%c2, %c0_14] : memref<3x128xf32, #tpu.memory_space<vmem>>, vector<1x128xf32>
    %18 = vector.broadcast %17 : vector<1x128xf32> to vector<8x128xf32>
    %19 = arith.addf %16, %18 : vector<8x128xf32>
    %c0_15 = arith.constant 0 : index
    %c0_16 = arith.constant 0 : index
    %20 = vector.load %arg6[%c0_15, %c0_16] : memref<8x128xf32, #tpu.memory_space<vmem>>, vector<8x128xf32>
    tpu.vector_store %arg6[%c0_15, %c0_16], %19 {strides = array<i32>} : memref<8x128xf32, #tpu.memory_space<vmem>>, vector<8x128xf32>,
    return
  }
  func.func @transform_0(%arg0: i32) -> (i32, i32) {
    %c0_i32 = arith.constant 0 : i32
    %c0_i32_0 = arith.constant 0 : i32
    return %arg0, %c0_i32 : i32, i32
  }
  func.func @transform_1(%arg0: i32) -> (i32, i32) {
    %c0_i32 = arith.constant 0 : i32
    %c0_i32_0 = arith.constant 0 : i32
    %c0_i32_1 = arith.constant 0 : i32
    return %c0_i32, %c0_i32_0 : i32, i32
  }
  func.func @transform_2(%arg0: i32) -> (i32, i32) {
    %c0_i32 = arith.constant 0 : i32
    %c0_i32_0 = arith.constant 0 : i32
    %c0_i32_1 = arith.constant 0 : i32
    return %c0_i32, %c0_i32_0 : i32, i32
  }
  func.func @transform_3(%arg0: i32) -> (i32, i32) {
    %c0_i32 = arith.constant 0 : i32
    %c0_i32_0 = arith.constant 0 : i32
    %c0_i32_1 = arith.constant 0 : i32
    return %c0_i32, %c0_i32_0 : i32, i32
  }
  func.func @transform_4(%arg0: i32) -> (i32, i32) {
    %c0_i32 = arith.constant 0 : i32
    %c0_i32_0 = arith.constant 0 : i32
    %c0_i32_1 = arith.constant 0 : i32
    return %c0_i32, %c0_i32_0 : i32, i32
  }
  func.func @transform_5(%arg0: i32) -> (i32, i32) {
    %c0_i32 = arith.constant 0 : i32
    %c0_i32_0 = arith.constant 0 : i32
    return %arg0, %c0_i32 : i32, i32
  }
}

</mosaic_0001>

<bundles_post_ra>
// kernel: tpu_custom_call.1
= control target key start
LH: loop header
LB: loop body
LE: loop exit
PB: predicated region body
PF: predicated region fallthrough
CT: control target
= control target key end

     0   :  { %10 = vsyncpa [#allocation3], 0  ;;  %s2095_s0 = inlined_call_operand.hbm [shape: f32[8,128], index: 0, kind: input, shape index: {}]   ;;  %s2096_s1 = inlined_call_operand.hbm [shape: f32[3,128], index: 1, kind: input, shape index: {}]   ;;  %s2097_s2 = inlined_call_operand.hbm [shape: f32[128,128], index: 2, kind: input, shape index: {}]   ;;  %s2098_s3 = inlined_call_operand.hbm [shape: f32[128,128], index: 3, kind: input, shape index: {}]   ;;  %s2099_s4 = inlined_call_operand.hbm [shape: f32[128,128], index: 4, kind: input, shape index: {}]   ;;  %s2100_s5 = inlined_call_operand.hbm [shape: f32[8,128], index: 5, kind: output, shape index: {}]  }
   0x1   :  { %11 = vsyncpa [#allocation6], 0 }
   0x2   :  { %12 = vsyncpa [#allocation9], 0  ;;  %s30_s20 = sshll.u32 %s2096_s1, 4  ;;  %s31_s20 = int_to_ptr.hbm [resolvable:$true] %s30_s20 }
   0x3   :  { %13 = vsyncpa [#allocation4], 0  ;;  %s1358_s21 = smov [#allocation5]   ;;  %s53_s25 = sshll.u32 %s2098_s3, 4  ;;  %s54_s25 = int_to_ptr.hbm [resolvable:$true] %s53_s25 }
   0x4   :  { %s32_s22 = sshll.u32 %s1358_s21, 4  ;;  %s1359_s26 = smov [#allocation8]   ;;  %s33_s22 = int_to_ptr.vmem [resolvable:$true] %s32_s22 }
   0x5   :  { %35 = dma.hbm_to_vmem [thread:$0]  %s31_s20, 64, %s33_s22, [#allocation6]  }
   0x6   :  { %s55_s27 = sshll.u32 %s1359_s26, 4  ;;  %s19_s30 = sshll.u32 %s2095_s0, 4  ;;  %s56_s27 = int_to_ptr.vmem [resolvable:$true] %s55_s27  ;;  %s20_s30 = int_to_ptr.hbm [resolvable:$true] %s19_s30 }
   0x7   :  { %s1360_s1 = smov 128   ;;  %s1361_s6 = smov 8  }
   0x8   :  { %61 = dma.hbm_to_vmem [thread:$0]  %s54_s25, 2048, %s56_s27, [#allocation9], %s1360_s1, %s1360_s1, %s1361_s6  }
   0x9   :  { %s40_s9 = sshll.u32 %s2097_s2, 4  ;;  %s1362_s10 = smov [#allocation2]   ;;  %s41_s9 = int_to_ptr.hbm [resolvable:$true] %s40_s9 }
   0xa   :  { %s21_s11 = sshll.u32 %s1362_s10, 4  ;;  %s1363_s3 = smov [#allocation7]   ;;  %s22_s11 = int_to_ptr.vmem [resolvable:$true] %s21_s11 }
   0xb   :  { %24 = dma.hbm_to_vmem [thread:$0]  %s20_s30, 128, %s22_s11, [#allocation3]  }
   0xc   :  { %s42_s12 = sshll.u32 %s1363_s3, 4  ;;  %s66_s0 = sshll.u32 %s2099_s4, 4  ;;  %s43_s12 = int_to_ptr.vmem [resolvable:$true] %s42_s12  ;;  %s67_s0 = int_to_ptr.hbm [resolvable:$true] %s66_s0 }
   0xd   :  { %48 = dma.hbm_to_vmem [thread:$0]  %s41_s9, 2048, %s43_s12, [#allocation6], %s1360_s1, %s1360_s1, %s1361_s6  }
   0xe   :  { %s1364_s15 = smov [#allocation10]  }
   0xf   :  { %s68_s16 = sshll.u32 %s1364_s15, 4  ;;  %s69_s16 = int_to_ptr.vmem [resolvable:$true] %s68_s16 }
  0x10   :  { %74 = dma.hbm_to_vmem [thread:$0]  %s67_s0, 2048, %s69_s16, [#allocation9], %s1360_s1, %s1360_s1, %s1361_s6  }
  0x11   :  { %1350 = dma.done.wait [#allocation3], 128  }
  0x12   :  { %1351 = vsyncadd [#allocation3], 4294967168 }
  0x13   :  { %1352 = dma.done.wait [#allocation6], 2112  }
  0x14   :  { %1353 = vsyncadd [#allocation6], 4294965184 }
  0x15   :  { %1354 = dma.done.wait [#allocation9], 4096  }
  0x16   :  { %1355 = vsyncadd [#allocation9], 4294963200  ;;  %v111_v0 = vld [vmem:[#allocation7 + $0x78] sm:$0xff]  ;;  %v110_v1 = vld [vmem:[#allocation7 + $0x70] sm:$0xff]  ;;  %s1365_s2 = smov [#allocation11]   ;;  %s1183_s19 = sshll.u32 %s2100_s5, 4  ;;  %s1184_s19 = int_to_ptr.hbm [resolvable:$true] %s1183_s19 }
  0x17   :  { %v109_v2 = vld [vmem:[#allocation7 + $0x68] sm:$0xff]  ;;  %v1411_v3 = vand.u32 4294901760, %v111_v0  ;;  %v1413_v4 = vand.u32 4294901760, %v110_v1  ;;  %v108_v6 = vld [vmem:[#allocation7 + $0x60] sm:$0xff]  ;;  %v107_v7 = vld [vmem:[#allocation7 + $0x58] sm:$0xff]  ;;  %s1181_s4 = sshll.u32 %s1365_s2, 4  ;;  %s1182_s4 = int_to_ptr.vmem [resolvable:$true] %s1181_s4 }
  0x18   :  { %v1415_v5 = vand.u32 4294901760, %v109_v2  ;;  %v106_v8 = vld [vmem:[#allocation7 + $0x50] sm:$0xff]  ;;  %v1417_v9 = vand.u32 4294901760, %v108_v6  ;;  %v1419_v10 = vand.u32 4294901760, %v107_v7  ;;  %v105_v12 = vld [vmem:[#allocation7 + $0x48] sm:$0xff]  ;;  %v104_v13 = vld [vmem:[#allocation7 + $0x40] sm:$0xff] }
  0x19   :  { %v1421_v11 = vand.u32 4294901760, %v106_v8  ;;  %115 = vmatpush.msra.mxu0 %v1411_v3  ;;  %v1425_v14 = vsub.f32 %v111_v0, %v1411_v3  ;;  %v1428_v15 = vsub.f32 %v110_v1, %v1413_v4  ;;  %v1433_v17 = vand.u32 4294901760, %v105_v12  ;;  %311 = vmatpush.msra.mxu3 %v1411_v3  ;;  %v103_v21 = vld [vmem:[#allocation7 + $0x38] sm:$0xff]  ;;  %v102_v34 = vld [vmem:[#allocation7 + $0x30] sm:$0xff]  ;;  %v101_v35 = vld [vmem:[#allocation7 + $0x28] sm:$0xff] }
  0x1a   :  { %v1431_v16 = vsub.f32 %v109_v2, %v1415_v5  ;;  %v1437_v18 = vsub.f32 %v108_v6, %v1417_v9  ;;  %v1440_v19 = vsub.f32 %v107_v7, %v1419_v10  ;;  %v1442_v20 = vand.u32 4294901760, %v104_v13  ;;  %v100_v42 = vld [vmem:[#allocation7 + $0x20] sm:$0xff]  ;;  %v99_v47 = vld [vmem:[#allocation7 + $0x18] sm:$0xff]  ;;  %v98_v53 = vld [vmem:[#allocation7 + $0x10] sm:$0xff] }
  0x1b   :  { %117 = vmatpush.msra.mxu0 %v1413_v4  ;;  %v157_v22 = vand.u32 4294901760, %v1425_v14  ;;  %v163_v23 = vand.u32 4294901760, %v1428_v15  ;;  %v1449_v25 = vsub.f32 %v106_v8, %v1421_v11  ;;  %258 = vmatpush.msra.mxu2 %v1425_v14  ;;  %v1455_v28 = vsub.f32 %v105_v12, %v1433_v17  ;;  %v97_v61 = vld [vmem:[#allocation7 + $0x8] sm:$0xff]  ;;  %v96_v2 = vld [vmem:[#allocation7] sm:$0xff] }
  0x1c   :  { %v169_v24 = vand.u32 4294901760, %v1431_v16  ;;  %v175_v26 = vand.u32 4294901760, %v1437_v18  ;;  %v181_v27 = vand.u32 4294901760, %v1440_v19  ;;  %313 = vmatpush.msra.mxu3 %v1413_v4  ;;  %v1468_v32 = vand.u32 4294901760, %v103_v21 }
  0x1d   :  { %v158_v29 = vsub.f32 %v1425_v14, %v157_v22  ;;  %119 = vmatpush.msra.mxu0 %v1415_v5  ;;  %v164_v30 = vsub.f32 %v1428_v15, %v163_v23  ;;  %261 = vmatpush.msra.mxu2 %v1428_v15  ;;  %v1472_v33 = vsub.f32 %v104_v13, %v1442_v20  ;;  %v187_v39 = vand.u32 4294901760, %v1449_v25  ;;  %v471_v14 = vld [vmem:[#allocation8 + $0x78] sm:$0xff] }
  0x1e   :  { %v170_v31 = vsub.f32 %v1431_v16, %v169_v24  ;;  %315 = vmatpush.msra.mxu3 %v1415_v5  ;;  %v176_v38 = vsub.f32 %v1437_v18, %v175_v26  ;;  %v182_v40 = vsub.f32 %v1440_v19, %v181_v27  ;;  %v193_v41 = vand.u32 4294901760, %v1455_v28 }
  0x1f   :  { %v159_v36 = vand.u32 4294901760, %v158_v29  ;;  %v165_v37 = vand.u32 4294901760, %v164_v30  ;;  %121 = vmatpush.msra.mxu0 %v1417_v9  ;;  %264 = vmatpush.msra.mxu2 %v1431_v16  ;;  %v1487_v44 = vand.u32 4294901760, %v102_v34  ;;  %v1490_v45 = vsub.f32 %v103_v21, %v1468_v32  ;;  %v95_v29 = vld [vmem:[#allocation2] sm:$0xff] }
  0x20   :  { %317 = vmatpush.msra.mxu3 %v1417_v9  ;;  %v171_v43 = vand.u32 4294901760, %v170_v31  ;;  %v1492_v46 = vand.u32 4294901760, %v101_v35  ;;  %v199_v48 = vand.u32 4294901760, %v1472_v33  ;;  %v177_v49 = vand.u32 4294901760, %v176_v38 }
  0x21   :  { %160 = vmatpush.msra.mxu1 %v159_v36  ;;  %123 = vmatpush.msra.mxu0 %v1419_v10  ;;  %v188_v50 = vsub.f32 %v1449_v25, %v187_v39  ;;  %v1502_v51 = vsub.f32 %v102_v34, %v1487_v44  ;;  %v1504_v52 = vand.u32 4294901760, %v100_v42  ;;  %v1506_v54 = vand.u32 4294901760, %v99_v47 }
  0x22   :  { %267 = vmatpush.msra.mxu2 %v1437_v18  ;;  %319 = vmatpush.msra.mxu3 %v1419_v10  ;;  %v183_v55 = vand.u32 4294901760, %v182_v40  ;;  %v194_v56 = vsub.f32 %v1455_v28, %v193_v41  ;;  %v205_v57 = vand.u32 4294901760, %v1490_v45  ;;  %v1516_v58 = vsub.f32 %v101_v35, %v1492_v46 }
  0x23   :  { %166 = vmatpush.msra.mxu1 %v165_v37  ;;  %125 = vmatpush.msra.mxu0 %v1421_v11  ;;  %v200_v59 = vsub.f32 %v1472_v33, %v199_v48  ;;  %v1521_v60 = vand.u32 4294901760, %v98_v53  ;;  %v189_v62 = vand.u32 4294901760, %v188_v50  ;;  %v211_v63 = vand.u32 4294901760, %v1502_v51 }
  0x24   :  { %270 = vmatpush.msra.mxu2 %v1440_v19  ;;  %321 = vmatpush.msra.mxu3 %v1421_v11  ;;  %v1528_v0 = vsub.f32 %v100_v42, %v1504_v52  ;;  %v1531_v1 = vsub.f32 %v99_v47, %v1506_v54  ;;  %v195_v6 = vand.u32 4294901760, %v194_v56  ;;  %v206_v7 = vsub.f32 %v1490_v45, %v205_v57  ;;  %v464_v19 = vld [vmem:[#allocation8 + $0x40] sm:$0xff] }
  0x25   :  { %172 = vmatpush.msra.mxu1 %v171_v43  ;;  %127 = vmatpush.msra.mxu0 %v1433_v17  ;;  %v217_v8 = vand.u32 4294901760, %v1516_v58  ;;  %v1540_v12 = vand.u32 4294901760, %v97_v61  ;;  %v201_v13 = vand.u32 4294901760, %v200_v59  ;;  %v1543_v21 = vsub.f32 %v98_v53, %v1521_v60 }
  0x26   :  { %273 = vmatpush.msra.mxu2 %v1449_v25  ;;  %323 = vmatpush.msra.mxu3 %v1433_v17  ;;  %v212_v30 = vsub.f32 %v1502_v51, %v211_v63  ;;  %v223_v31 = vand.u32 4294901760, %v1528_v0  ;;  %v1552_v34 = vand.u32 4294901760, %v96_v2  ;;  %v1554_v35 = vand.u32 4294901760, %v95_v29 }
  0x27   :  { %178 = vmatpush.msra.mxu1 %v177_v49  ;;  %129 = vmatpush.msra.mxu0 %v1442_v20  ;;  %v229_v36 = vand.u32 4294901760, %v1531_v1  ;;  %v207_v37 = vand.u32 4294901760, %v206_v7  ;;  %v218_v38 = vsub.f32 %v1516_v58, %v217_v8  ;;  %v1564_v40 = vsub.f32 %v97_v61, %v1540_v12 }
  0x28   :  { %276 = vmatpush.msra.mxu2 %v1455_v28  ;;  %325 = vmatpush.msra.mxu3 %v1442_v20  ;;  %v147_v42 = vsub.f32 %v95_v29, %v1554_v35  ;;  %v213_v43 = vand.u32 4294901760, %v212_v30  ;;  %v224_v47 = vsub.f32 %v1528_v0, %v223_v31  ;;  %v235_v49 = vand.u32 4294901760, %v1543_v21 }
  0x29   :  { %184 = vmatpush.msra.mxu1 %v183_v55  ;;  %131 = vmatpush.msra.mxu0 %v1468_v32  ;;  %v1575_v50 = vsub.f32 %v96_v2, %v1552_v34  ;;  %v219_v53 = vand.u32 4294901760, %v218_v38  ;;  %v230_v55 = vsub.f32 %v1531_v1, %v229_v36  ;;  %v241_v56 = vand.u32 4294901760, %v1564_v40 }
  0x2a   :  { %279 = vmatpush.msra.mxu2 %v1472_v33  ;;  %327 = vmatpush.msra.mxu3 %v1468_v32  ;;  %v148_v59 = vand.u32 4294901760, %v147_v42  ;;  %v225_v61 = vand.u32 4294901760, %v224_v47  ;;  %v469_v47 = vld [vmem:[#allocation8 + $0x68] sm:$0xff]  ;;  %v1617_v15 = vand.u32 4294901760, %v471_v14  ;;  %v463_v33 = vld [vmem:[#allocation8 + $0x38] sm:$0xff] }
  0x2b   :  { %190 = vmatpush.msra.mxu1 %v189_v62  ;;  %133 = vmatpush.msra.mxu0 %v1487_v44  ;;  %v236_v62 = vsub.f32 %v1543_v21, %v235_v49  ;;  %v247_v2 = vand.u32 4294901760, %v1575_v50  ;;  %v242_v7 = vsub.f32 %v1564_v40, %v241_v56  ;;  %v1621_v16 = vand.u32 4294901760, %v469_v47 }
  0x2c   :  { %282 = vmatpush.msra.mxu2 %v1490_v45  ;;  %329 = vmatpush.msra.mxu3 %v1487_v44  ;;  %v1696_v45 = vand.u32 4294901760, %v463_v33 }
  0x2d   :  { %196 = vmatpush.msra.mxu1 %v195_v6  ;;  %135 = vmatpush.msra.mxu0 %v1492_v46  ;;  %v231_v6 = vand.u32 4294901760, %v230_v55  ;;  %v237_v29 = vand.u32 4294901760, %v236_v62  ;;  %v248_v30 = vsub.f32 %v1575_v50, %v247_v2 }
  0x2e   :  { %285 = vmatpush.msra.mxu2 %v1502_v51  ;;  %331 = vmatpush.msra.mxu3 %v1492_v46  ;;  %v1711_v51 = vsub.f32 %v463_v33, %v1696_v45 }
  0x2f   :  { %202 = vmatpush.msra.mxu1 %v201_v13  ;;  %137 = vmatpush.msra.mxu0 %v1504_v52  ;;  %v149_v13 = vsub.f32 %v147_v42, %v148_v59 }
  0x30   :  { %288 = vmatpush.msra.mxu2 %v1516_v58  ;;  %333 = vmatpush.msra.mxu3 %v1504_v52 }
  0x31   :  { %208 = vmatpush.msra.mxu1 %v207_v37  ;;  %139 = vmatpush.msra.mxu0 %v1506_v54  ;;  %v243_v37 = vand.u32 4294901760, %v242_v7  ;;  %v150_v38 = vand.u32 4294901760, %v149_v13  ;;  %v1657_v13 = vand.u32 4294901760, %v464_v19 }
  0x32   :  { %291 = vmatpush.msra.mxu2 %v1528_v0  ;;  %335 = vmatpush.msra.mxu3 %v1506_v54  ;;  %v457_v0 = vld [vmem:[#allocation8 + $0x8] sm:$0xff] }
  0x33   :  { %214 = vmatpush.msra.mxu1 %v213_v43  ;;  %141 = vmatpush.msra.mxu0 %v1521_v60  ;;  %v249_v43 = vand.u32 4294901760, %v248_v30 }
  0x34   :  { %294 = vmatpush.msra.mxu2 %v1531_v1  ;;  %337 = vmatpush.msra.mxu3 %v1521_v60  ;;  %v456_v1 = vld [vmem:[#allocation8] sm:$0xff] }
  0x35   :  { %220 = vmatpush.msra.mxu1 %v219_v53  ;;  %143 = vmatpush.msra.mxu0 %v1540_v12  ;;  %v466_v53 = vld [vmem:[#allocation8 + $0x50] sm:$0xff] }
  0x36   :  { %297 = vmatpush.msra.mxu2 %v1543_v21  ;;  %339 = vmatpush.msra.mxu3 %v1540_v12  ;;  %v1628_v55 = vand.u32 4294901760, %v466_v53 }
  0x37   :  { %226 = vmatpush.msra.mxu1 %v225_v61  ;;  %145 = vmatpush.msra.mxu0 %v1552_v34  ;;  %v1640_v61 = vsub.f32 %v469_v47, %v1621_v16 }
  0x38   :  { %300 = vmatpush.msra.mxu2 %v1564_v40  ;;  %341 = vmatpush.msra.mxu3 %v1552_v34  ;;  %v1662_v30 = vsub.f32 %v466_v53, %v1628_v55 }
  0x39   :  { %352 = vmatpush.msrb.mxu0 %v157_v22  ;;  %232 = vmatpush.msra.mxu1 %v231_v6  ;;  %v470_v22 = vld [vmem:[#allocation8 + $0x70] sm:$0xff]  ;;  %v529_v7 = vand.u32 4294901760, %v1640_v61 }
  0x3a   :  { %303 = vmatpush.msra.mxu2 %v1575_v50  ;;  %345 = vmatmul.f32.vlgmr.msra.gmra.mxu3 %v148_v59 }
  0x3b   :  { %356 = vmatpush.msrb.mxu0 %v163_v23  ;;  %238 = vmatpush.msra.mxu1 %v237_v29  ;;  %v1619_v23 = vand.u32 4294901760, %v470_v22 }
  0x3c   :  { %306 = vmatmul.f32.vlgmr.msra.gmra.mxu2 %v147_v42  ;;  %151 = vmatmul.f32.vlgmr.msra.gmra.mxu0 %v150_v38  ;;  %v467_v42 = vld [vmem:[#allocation8 + $0x58] sm:$0xff] }
  0x3d   :  { %360 = vmatpush.msrb.mxu0 %v169_v24  ;;  %244 = vmatpush.msra.mxu1 %v243_v37  ;;  %v468_v24 = vld [vmem:[#allocation8 + $0x60] sm:$0xff]  ;;  %v1637_v59 = vsub.f32 %v470_v22, %v1619_v23  ;;  %v530_v37 = vsub.f32 %v1640_v61, %v529_v7 }
  0x3e   :  { %v1624_v18 = vand.u32 4294901760, %v468_v24  ;;  %475 = vmatpush.msrb.mxu2 %v1617_v15 }
  0x3f   :  { %364 = vmatpush.msrb.mxu0 %v175_v26  ;;  %250 = vmatpush.msra.mxu1 %v249_v43  ;;  %v1626_v26 = vand.u32 4294901760, %v467_v42  ;;  %v1685_v43 = vsub.f32 %v464_v19, %v1657_v13  ;;  %v531_v53 = vand.u32 4294901760, %v530_v37 }
  0x40   :  { %252 = vmatmul.f32.vlgmr.msra.gmra.mxu1 %v1554_v35  ;;  %v1645_v6 = vsub.f32 %v468_v24, %v1624_v18  ;;  %477 = vmatpush.msrb.mxu2 %v1619_v23  ;;  %v547_v24 = vand.u32 4294901760, %v1662_v30 }
  0x41   :  { %419 = vmatpush.msrb.mxu1 %v1411_v3  ;;  %368 = vmatpush.msrb.mxu0 %v181_v27  ;;  %v465_v3 = vld [vmem:[#allocation8 + $0x48] sm:$0xff]  ;;  %v1634_v27 = vsub.f32 %v471_v14, %v1617_v15 }
  0x42   :  { %v1642_v62 = vand.u32 4294901760, %v465_v3  ;;  %v535_v29 = vand.u32 4294901760, %v1645_v6  ;;  %479 = vmatpush.msrb.mxu2 %v1621_v16  ;;  %v461_v14 = vld [vmem:[#allocation8 + $0x28] sm:$0xff] }
  0x43   :  { %421 = vmatpush.msrb.mxu1 %v1413_v4  ;;  %372 = vmatpush.msrb.mxu0 %v187_v39  ;;  %v1649_v4 = vsub.f32 %v467_v42, %v1626_v26  ;;  %v517_v25 = vand.u32 4294901760, %v1634_v27  ;;  %v523_v39 = vand.u32 4294901760, %v1637_v59  ;;  %v460_v42 = vld [vmem:[#allocation8 + $0x20] sm:$0xff]  ;;  %v1704_v19 = vand.u32 4294901760, %v461_v14 }
  0x44   :  { %v536_v47 = vsub.f32 %v1645_v6, %v535_v29  ;;  %481 = vmatpush.msrb.mxu2 %v1624_v18 }
  0x45   :  { %423 = vmatpush.msrb.mxu1 %v1415_v5  ;;  %376 = vmatpush.msrb.mxu0 %v193_v41  ;;  %v518_v5 = vsub.f32 %v1634_v27, %v517_v25  ;;  %v524_v28 = vsub.f32 %v1637_v59, %v523_v39  ;;  %v1674_v41 = vsub.f32 %v465_v3, %v1642_v62 }
  0x46   :  { %483 = vmatpush.msrb.mxu2 %v1626_v26 }
  0x47   :  { %425 = vmatpush.msrb.mxu1 %v1417_v9  ;;  %380 = vmatpush.msrb.mxu0 %v199_v48  ;;  %v541_v9 = vand.u32 4294901760, %v1649_v4  ;;  %v462_v48 = vld [vmem:[#allocation8 + $0x30] sm:$0xff]  ;;  %v519_v38 = vand.u32 4294901760, %v518_v5  ;;  %v525_v22 = vand.u32 4294901760, %v524_v28  ;;  %v537_v5 = vand.u32 4294901760, %v536_v47 }
  0x48   :  { %v548_v28 = vsub.f32 %v1662_v30, %v547_v24  ;;  %485 = vmatpush.msrb.mxu2 %v1628_v55 }
  0x49   :  { %427 = vmatpush.msrb.mxu1 %v1419_v10  ;;  %384 = vmatpush.msrb.mxu0 %v205_v57  ;;  %v553_v10 = vand.u32 4294901760, %v1674_v41  ;;  %v1698_v57 = vand.u32 4294901760, %v462_v48  ;;  %v542_v3 = vsub.f32 %v1649_v4, %v541_v9 }
  0x4a   :  { %520 = vmatpush.msrb.mxu3 %v519_v38  ;;  %v565_v38 = vand.u32 4294901760, %v1711_v51  ;;  %487 = vmatpush.msrb.mxu2 %v1642_v62 }
  0x4b   :  { %429 = vmatpush.msrb.mxu1 %v1421_v11  ;;  %388 = vmatpush.msrb.mxu0 %v211_v63  ;;  %v559_v11 = vand.u32 4294901760, %v1685_v43  ;;  %v459_v63 = vld [vmem:[#allocation8 + $0x18] sm:$0xff]  ;;  %v1718_v37 = vsub.f32 %v462_v48, %v1698_v57  ;;  %v554_v58 = vsub.f32 %v1674_v41, %v553_v10  ;;  %v543_v33 = vand.u32 4294901760, %v542_v3 }
  0x4c   :  { %526 = vmatpush.msrb.mxu3 %v525_v22  ;;  %v1731_v48 = vsub.f32 %v461_v14, %v1704_v19  ;;  %v1733_v22 = vand.u32 4294901760, %v459_v63  ;;  %489 = vmatpush.msrb.mxu2 %v1657_v13 }
  0x4d   :  { %431 = vmatpush.msrb.mxu1 %v1433_v17  ;;  %392 = vmatpush.msrb.mxu0 %v217_v8  ;;  %v1720_v17 = vand.u32 4294901760, %v460_v42  ;;  %v458_v8 = vld [vmem:[#allocation8 + $0x10] sm:$0xff]  ;;  %v571_v47 = vand.u32 4294901760, %v1718_v37 }
  0x4e   :  { %532 = vmatpush.msrb.mxu3 %v531_v53  ;;  %v1746_v53 = vand.u32 4294901760, %v458_v8  ;;  %v577_v3 = vand.u32 4294901760, %v1731_v48  ;;  %491 = vmatpush.msrb.mxu2 %v1696_v45 }
  0x4f   :  { %433 = vmatpush.msrb.mxu1 %v1442_v20  ;;  %396 = vmatpush.msrb.mxu0 %v223_v31  ;;  %v560_v20 = vsub.f32 %v1685_v43, %v559_v11  ;;  %v549_v31 = vand.u32 4294901760, %v548_v28  ;;  %v1744_v14 = vsub.f32 %v460_v42, %v1720_v17  ;;  %v1757_v42 = vsub.f32 %v459_v63, %v1733_v22 }
  0x50   :  { %538 = vmatpush.msrb.mxu3 %v537_v5  ;;  %v1759_v5 = vand.u32 4294901760, %v457_v0  ;;  %v572_v21 = vsub.f32 %v1718_v37, %v571_v47  ;;  %493 = vmatpush.msrb.mxu2 %v1698_v57  ;;  %v1770_v63 = vsub.f32 %v458_v8, %v1746_v53  ;;  %v1772_v28 = vand.u32 4294901760, %v456_v1 }
  0x51   :  { %435 = vmatpush.msrb.mxu1 %v1468_v32  ;;  %400 = vmatpush.msrb.mxu0 %v229_v36  ;;  %v555_v32 = vand.u32 4294901760, %v554_v58  ;;  %v566_v36 = vsub.f32 %v1711_v51, %v565_v38  ;;  %v578_v40 = vsub.f32 %v1731_v48, %v577_v3 }
  0x52   :  { %544 = vmatpush.msrb.mxu3 %v543_v33  ;;  %v1783_v58 = vsub.f32 %v457_v0, %v1759_v5  ;;  %495 = vmatpush.msrb.mxu2 %v1704_v19  ;;  %v1793_v8 = vsub.f32 %v456_v1, %v1772_v28 }
  0x53   :  { %437 = vmatpush.msrb.mxu1 %v1487_v44  ;;  %404 = vmatpush.msrb.mxu0 %v235_v49  ;;  %v561_v44 = vand.u32 4294901760, %v560_v20  ;;  %v583_v49 = vand.u32 4294901760, %v1744_v14 }
  0x54   :  { %550 = vmatpush.msrb.mxu3 %v549_v31  ;;  %v601_v20 = vand.u32 4294901760, %v1783_v58  ;;  %497 = vmatpush.msrb.mxu2 %v1720_v17  ;;  %v607_v31 = vand.u32 4294901760, %v1793_v8 }
  0x55   :  { %439 = vmatpush.msrb.mxu1 %v1492_v46  ;;  %408 = vmatpush.msrb.mxu0 %v241_v56  ;;  %v567_v46 = vand.u32 4294901760, %v566_v36  ;;  %v589_v56 = vand.u32 4294901760, %v1757_v42  ;;  %v584_v50 = vsub.f32 %v1744_v14, %v583_v49 }
  0x56   :  { %556 = vmatpush.msrb.mxu3 %v555_v32  ;;  %499 = vmatpush.msrb.mxu2 %v1733_v22  ;;  %v602_v32 = vsub.f32 %v1783_v58, %v601_v20 }
  0x57   :  { %441 = vmatpush.msrb.mxu1 %v1504_v52  ;;  %412 = vmatpush.msrb.mxu0 %v247_v2  ;;  %v573_v52 = vand.u32 4294901760, %v572_v21  ;;  %v595_v2 = vand.u32 4294901760, %v1770_v63  ;;  %v590_v33 = vsub.f32 %v1757_v42, %v589_v56  ;;  %v585_v0 = vand.u32 4294901760, %v584_v50 }
  0x58   :  { %414 = vmatmul.f32.vlgmr.msrb.gmra.mxu0 %v1554_v35  ;;  %562 = vmatpush.msrb.mxu3 %v561_v44 }
  0x59   :  { %443 = vmatpush.msrb.mxu1 %v1506_v54  ;;  %618 = vmatpush.msra.mxu0 %v1634_v27  ;;  %v579_v54 = vand.u32 4294901760, %v578_v40  ;;  %v822_v40 = vld [vmem:[#allocation10 + $0x30] sm:$0xff] }
  0x5a   :  { %568 = vmatpush.msrb.mxu3 %v567_v46  ;;  %501 = vmatpush.msrb.mxu2 %v1746_v53  ;;  %v823_v46 = vld [vmem:[#allocation10 + $0x38] sm:$0xff] }
  0x5b   :  { %445 = vmatpush.msrb.mxu1 %v1521_v60  ;;  %621 = vmatpush.msra.mxu0 %v1637_v59  ;;  %v596_v60 = vsub.f32 %v1770_v63, %v595_v2 }
  0x5c   :  { %574 = vmatpush.msrb.mxu3 %v573_v52  ;;  %503 = vmatpush.msrb.mxu2 %v1759_v5 }
  0x5d   :  { %447 = vmatpush.msrb.mxu1 %v1540_v12  ;;  %624 = vmatpush.msra.mxu0 %v1640_v61  ;;  %v591_v12 = vand.u32 4294901760, %v590_v33  ;;  %v597_v1 = vand.u32 4294901760, %v596_v60  ;;  %v831_v61 = vld [vmem:[#allocation10 + $0x78] sm:$0xff]  ;;  %v820_v33 = vld [vmem:[#allocation10 + $0x20] sm:$0xff]  ;;  %v1964_v60 = vand.u32 4294901760, %v823_v46 }
  0x5e   :  { %580 = vmatpush.msrb.mxu3 %v579_v54  ;;  %505 = vmatpush.msrb.mxu2 %v1772_v28 }
  0x5f   :  { %449 = vmatpush.msrb.mxu1 %v1552_v34  ;;  %627 = vmatpush.msra.mxu0 %v1645_v6  ;;  %v608_v34 = vsub.f32 %v1793_v8, %v607_v31  ;;  %v829_v6 = vld [vmem:[#allocation10 + $0x68] sm:$0xff] }
  0x60   :  { %451 = vmatmul.f32.vlgmr.msrb.gmra.mxu1 %v1554_v35  ;;  %586 = vmatpush.msrb.mxu3 %v585_v0  ;;  %v603_v35 = vand.u32 4294901760, %v602_v32 }
  0x61   :  { %671 = vmatpush.msra.mxu1 %v1617_v15  ;;  %630 = vmatpush.msra.mxu0 %v1649_v4  ;;  %v609_v36 = vand.u32 4294901760, %v608_v34  ;;  %v1897_v4 = vand.u32 4294901760, %v831_v61 }
  0x62   :  { %592 = vmatpush.msrb.mxu3 %v591_v12  ;;  %712 = vmatpush.msra.mxu2 %v517_v25 }
  0x63   :  { %673 = vmatpush.msra.mxu1 %v1619_v23  ;;  %633 = vmatpush.msra.mxu0 %v1662_v30 }
  0x64   :  { %598 = vmatpush.msrb.mxu3 %v597_v1  ;;  %716 = vmatpush.msra.mxu2 %v523_v39  ;;  %v1901_v39 = vand.u32 4294901760, %v829_v6 }
  0x65   :  { %675 = vmatpush.msra.mxu1 %v1621_v16  ;;  %636 = vmatpush.msra.mxu0 %v1674_v41 }
  0x66   :  { %604 = vmatpush.msrb.mxu3 %v603_v35  ;;  %720 = vmatpush.msra.mxu2 %v529_v7  ;;  %v828_v7 = vld [vmem:[#allocation10 + $0x60] sm:$0xff]  ;;  %v819_v35 = vld [vmem:[#allocation10 + $0x18] sm:$0xff] }
  0x67   :  { %677 = vmatpush.msra.mxu1 %v1624_v18  ;;  %639 = vmatpush.msra.mxu0 %v1685_v43  ;;  %v1903_v41 = vand.u32 4294901760, %v828_v7 }
  0x68   :  { %610 = vmatpush.msrb.mxu3 %v609_v36  ;;  %724 = vmatpush.msra.mxu2 %v535_v29  ;;  %v826_v29 = vld [vmem:[#allocation10 + $0x50] sm:$0xff] }
  0x69   :  { %679 = vmatpush.msra.mxu1 %v1626_v26  ;;  %642 = vmatpush.msra.mxu0 %v1711_v51  ;;  %v1907_v43 = vand.u32 4294901760, %v826_v29 }
  0x6a   :  { %779 = vmatpush.msra.mxu3 %v1617_v15  ;;  %728 = vmatpush.msra.mxu2 %v541_v9  ;;  %v1203_v15 = vld [vmem:[#allocation5] ss:$0 sm:$0xff] }
  0x6b   :  { %681 = vmatpush.msra.mxu1 %v1628_v55  ;;  %645 = vmatpush.msra.mxu0 %v1718_v37  ;;  %v1922_v37 = vsub.f32 %v828_v7, %v1903_v41 }
  0x6c   :  { %781 = vmatpush.msra.mxu3 %v1619_v23  ;;  %732 = vmatpush.msra.mxu2 %v547_v24  ;;  %v825_v24 = vld [vmem:[#allocation10 + $0x48] sm:$0xff] }
  0x6d   :  { %683 = vmatpush.msra.mxu1 %v1642_v62  ;;  %648 = vmatpush.msra.mxu0 %v1731_v48  ;;  %v1919_v51 = vand.u32 4294901760, %v825_v24 }
  0x6e   :  { %783 = vmatpush.msra.mxu3 %v1621_v16  ;;  %736 = vmatpush.msra.mxu2 %v553_v10  ;;  %v824_v10 = vld [vmem:[#allocation10 + $0x40] sm:$0xff] }
  0x6f   :  { %685 = vmatpush.msra.mxu1 %v1657_v13  ;;  %651 = vmatpush.msra.mxu0 %v1744_v14  ;;  %v1930_v48 = vand.u32 4294901760, %v824_v10 }
  0x70   :  { %785 = vmatpush.msra.mxu3 %v1624_v18  ;;  %740 = vmatpush.msra.mxu2 %v559_v11  ;;  %v1916_v11 = vsub.f32 %v829_v6, %v1901_v39 }
  0x71   :  { %687 = vmatpush.msra.mxu1 %v1696_v45  ;;  %654 = vmatpush.msra.mxu0 %v1757_v42  ;;  %v1938_v42 = vsub.f32 %v825_v24, %v1919_v51 }
  0x72   :  { %787 = vmatpush.msra.mxu3 %v1626_v26  ;;  %744 = vmatpush.msra.mxu2 %v565_v38  ;;  %v1928_v38 = vsub.f32 %v826_v29, %v1907_v43  ;;  %v889_v14 = vand.u32 4294901760, %v1916_v11 }
  0x73   :  { %689 = vmatpush.msra.mxu1 %v1698_v57  ;;  %657 = vmatpush.msra.mxu0 %v1770_v63  ;;  %v913_v54 = vand.u32 4294901760, %v1938_v42 }
  0x74   :  { %789 = vmatpush.msra.mxu3 %v1628_v55  ;;  %748 = vmatpush.msra.mxu2 %v571_v47  ;;  %v890_v21 = vsub.f32 %v1916_v11, %v889_v14  ;;  %v907_v63 = vand.u32 4294901760, %v1928_v38 }
  0x75   :  { %691 = vmatpush.msra.mxu1 %v1704_v19  ;;  %660 = vmatpush.msra.mxu0 %v1783_v58 }
  0x76   :  { %791 = vmatpush.msra.mxu3 %v1642_v62  ;;  %752 = vmatpush.msra.mxu2 %v577_v3  ;;  %v830_v62 = vld [vmem:[#allocation10 + $0x70] sm:$0xff]  ;;  %v895_v3 = vand.u32 4294901760, %v1922_v37  ;;  %v908_v32 = vsub.f32 %v1928_v38, %v907_v63 }
  0x77   :  { %693 = vmatpush.msra.mxu1 %v1720_v17  ;;  %663 = vmatpush.msra.mxu0 %v1793_v8  ;;  %v1899_v25 = vand.u32 4294901760, %v830_v62 }
  0x78   :  { %793 = vmatpush.msra.mxu3 %v1657_v13  ;;  %756 = vmatpush.msra.mxu2 %v583_v49  ;;  %v827_v13 = vld [vmem:[#allocation10 + $0x58] sm:$0xff]  ;;  %v896_v50 = vsub.f32 %v1922_v37, %v895_v3  ;;  %v909_v6 = vand.u32 4294901760, %v908_v32 }
  0x79   :  { %695 = vmatpush.msra.mxu1 %v1733_v22  ;;  %v1905_v9 = vand.u32 4294901760, %v827_v13  ;;  %835 = vmatpush.msrb.mxu0 %v1897_v4 }
  0x7a   :  { %795 = vmatpush.msra.mxu3 %v1696_v45  ;;  %760 = vmatpush.msra.mxu2 %v589_v56  ;;  %v897_v36 = vand.u32 4294901760, %v896_v50 }
  0x7b   :  { %697 = vmatpush.msra.mxu1 %v1746_v53  ;;  %837 = vmatpush.msrb.mxu0 %v1899_v25 }
  0x7c   :  { %797 = vmatpush.msra.mxu3 %v1698_v57  ;;  %764 = vmatpush.msra.mxu2 %v595_v2  ;;  %v1910_v57 = vsub.f32 %v831_v61, %v1897_v4  ;;  %v821_v2 = vld [vmem:[#allocation10 + $0x28] sm:$0xff]  ;;  %v1991_v61 = vand.u32 4294901760, %v819_v35 }
  0x7d   :  { %699 = vmatpush.msra.mxu1 %v1759_v5  ;;  %839 = vmatpush.msrb.mxu0 %v1901_v39  ;;  %v1972_v34 = vand.u32 4294901760, %v821_v2 }
  0x7e   :  { %799 = vmatpush.msra.mxu3 %v1704_v19  ;;  %768 = vmatpush.msra.mxu2 %v601_v20  ;;  %v1913_v19 = vsub.f32 %v830_v62, %v1899_v25  ;;  %v891_v20 = vand.u32 4294901760, %v890_v21 }
  0x7f   :  { %701 = vmatpush.msra.mxu1 %v1772_v28  ;;  %841 = vmatpush.msrb.mxu0 %v1903_v41 }
  0x80   :  { %801 = vmatpush.msra.mxu3 %v1720_v17  ;;  %772 = vmatpush.msra.mxu2 %v607_v31  ;;  %v1925_v17 = vsub.f32 %v827_v13, %v1905_v9  ;;  %v883_v47 = vand.u32 4294901760, %v1913_v19  ;;  %v1966_v31 = vand.u32 4294901760, %v822_v40 }
  0x81   :  { %843 = vmatpush.msrb.mxu0 %v1905_v9 }
  0x82   :  { %803 = vmatpush.msra.mxu3 %v1733_v22  ;;  %v877_v22 = vand.u32 4294901760, %v1910_v57  ;;  %v884_v44 = vsub.f32 %v1913_v19, %v883_v47  ;;  %v901_v49 = vand.u32 4294901760, %v1925_v17 }
  0x83   :  { %845 = vmatpush.msrb.mxu0 %v1907_v43 }
  0x84   :  { %805 = vmatpush.msra.mxu3 %v1746_v53  ;;  %v885_v52 = vand.u32 4294901760, %v884_v44  ;;  %v902_v0 = vsub.f32 %v1925_v17, %v901_v49 }
  0x85   :  { %847 = vmatpush.msrb.mxu0 %v1919_v51 }
  0x86   :  { %807 = vmatpush.msra.mxu3 %v1759_v5  ;;  %v878_v5 = vsub.f32 %v1910_v57, %v877_v22 }
  0x87   :  { %849 = vmatpush.msrb.mxu0 %v1930_v48 }
  0x88   :  { %809 = vmatpush.msra.mxu3 %v1772_v28  ;;  %v1953_v28 = vsub.f32 %v824_v10, %v1930_v48  ;;  %v879_v58 = vand.u32 4294901760, %v878_v5 }
  0x89   :  { %851 = vmatpush.msrb.mxu0 %v1964_v60 }
  0x8a   :  { %880 = vmatpush.msrb.mxu1 %v879_v58  ;;  %v919_v1 = vand.u32 4294901760, %v1953_v28 }
  0x8b   :  { %853 = vmatpush.msrb.mxu0 %v1966_v31 }
  0x8c   :  { %886 = vmatpush.msrb.mxu1 %v885_v52  ;;  %v920_v7 = vsub.f32 %v1953_v28, %v919_v1 }
  0x8d   :  { %855 = vmatpush.msrb.mxu0 %v1972_v34 }
  0x8e   :  { %892 = vmatpush.msrb.mxu1 %v891_v20  ;;  %v921_v44 = vand.u32 4294901760, %v920_v7 }
  0x90   :  { %898 = vmatpush.msrb.mxu1 %v897_v36 }
  0xb9   :  { %v152_v23 = vpop.f32.mrf.mxu0 }
  0xba   :  { %v153_v16 = vadd.f32 %v1203_v15, %v152_v23  ;;  %v1975_v15 = vsub.f32 %v823_v46, %v1964_v60  ;;  %v1979_v23 = vsub.f32 %v822_v40, %v1966_v31 }
  0xbc   :  { %v931_v13 = vand.u32 4294901760, %v1979_v23 }
  0xbd   :  { %v253_v18 = vpop.f32.mrf.mxu1  ;;  %v346_v59 = vpop.f32.mrf.mxu3 }
  0xbe   :  { %v254_v26 = vadd.f32 %v253_v18, %v153_v16  ;;  %v1981_v16 = vand.u32 4294901760, %v820_v33  ;;  %v932_v21 = vsub.f32 %v1979_v23, %v931_v13 }
  0xbf   :  { %v307_v55 = vpop.f32.mrf.mxu2 }
  0xc0   :  { %v308_v27 = vadd.f32 %v307_v55, %v254_v26  ;;  %v914_v26 = vsub.f32 %v1938_v42, %v913_v54  ;;  %v903_v55 = vand.u32 4294901760, %v902_v0  ;;  %v1999_v29 = vsub.f32 %v820_v33, %v1981_v16  ;;  %857 = vmatpush.msrb.mxu0 %v1981_v16 }
  0xc1   :  { %v933_v50 = vand.u32 4294901760, %v932_v21 }
  0xc2   :  { %v347_v30 = vadd.f32 %v346_v59, %v308_v27  ;;  %v925_v27 = vand.u32 4294901760, %v1975_v15  ;;  %v1989_v59 = vsub.f32 %v821_v2, %v1972_v34  ;;  %904 = vmatpush.msrb.mxu1 %v903_v55  ;;  %v915_v24 = vand.u32 4294901760, %v914_v26  ;;  %859 = vmatpush.msrb.mxu0 %v1991_v61  ;;  %v816_v26 = vld [vmem:[#allocation10] sm:$0xff] }
  0xc3   :  { %v943_v46 = vand.u32 4294901760, %v1999_v29 }
  0xc4   :  { %v926_v10 = vsub.f32 %v1975_v15, %v925_v27  ;;  %910 = vmatpush.msrb.mxu1 %v909_v6  ;;  %v864_v6 = vand.u32 4294901760, %v816_v26 }
  0xc5   :  { %v944_v2 = vsub.f32 %v1999_v29, %v943_v46 }
  0xc6   :  { %916 = vmatpush.msrb.mxu1 %v915_v24  ;;  %v966_v24 = vsub.f32 %v816_v26, %v864_v6 }
  0xc7   :  { %v945_v20 = vand.u32 4294901760, %v944_v2 }
  0xc8   :  { %922 = vmatpush.msrb.mxu1 %v921_v44  ;;  %v967_v44 = vand.u32 4294901760, %v966_v24 }
  0xd5   :  { %v415_v45 = vpop.f32.mrf.mxu0 }
  0xd6   :  { %v416_v53 = vadd.f32 %v415_v45, %v347_v30  ;;  %v937_v45 = vand.u32 4294901760, %v1989_v59 }
  0xd8   :  { %v938_v58 = vsub.f32 %v1989_v59, %v937_v45 }
  0xdd   :  { %v452_v56 = vpop.f32.mrf.mxu1 }
  0xde   :  { %v453_v8 = vadd.f32 %v452_v56, %v416_v53  ;;  %v2008_v53 = vsub.f32 %v819_v35, %v1991_v61  ;;  %v927_v56 = vand.u32 4294901760, %v926_v10  ;;  %v817_v35 = vld [vmem:[#allocation10 + $0x8] sm:$0xff] }
  0xe0   :  { %v455_v12 = vmax.f32 %v453_v8, 0.0  ;;  %v949_v52 = vand.u32 4294901760, %v2008_v53  ;;  %928 = vmatpush.msrb.mxu1 %v927_v56  ;;  %v939_v8 = vand.u32 4294901760, %v938_v58 }
  0xe2   :  { %v506_v18 = vand.u32 4294901760, %v455_v12  ;;  %v950_v33 = vsub.f32 %v2008_v53, %v949_v52  ;;  %934 = vmatpush.msrb.mxu1 %v933_v50 }
  0xe4   :  { %v507_v62 = vsub.f32 %v455_v12, %v506_v18  ;;  %612 = vmatmul.f32.vlgmr.msrb.gmra.mxu3 %v506_v18  ;;  %940 = vmatpush.msrb.mxu1 %v939_v8  ;;  %v951_v0 = vand.u32 4294901760, %v950_v33  ;;  %v818_v12 = vld [vmem:[#allocation10 + $0x10] sm:$0xff] }
  0xe5   :  { %1031 = vmatpush.msrb.mxu3 %v1897_v4  ;;  %v860_v32 = vand.u32 4294901760, %v818_v12 }
  0xe6   :  { %666 = vmatmul.f32.vlgmr.msra.gmra.mxu0 %v507_v62  ;;  %v508_v30 = vand.u32 4294901760, %v507_v62  ;;  %946 = vmatpush.msrb.mxu1 %v945_v20 }
  0xe7   :  { %1033 = vmatpush.msrb.mxu3 %v1899_v25  ;;  %v954_v36 = vsub.f32 %v818_v12, %v860_v32  ;;  %861 = vmatpush.msrb.mxu0 %v860_v32 }
  0xe8   :  { %705 = vmatmul.f32.vlgmr.msra.gmra.mxu1 %v508_v30  ;;  %v509_v5 = vsub.f32 %v507_v62, %v508_v30 }
  0xe9   :  { %1035 = vmatpush.msrb.mxu3 %v1901_v39  ;;  %952 = vmatpush.msrb.mxu1 %v951_v0  ;;  %v955_v55 = vand.u32 4294901760, %v954_v36 }
  0xea   :  { %v510_v40 = vand.u32 4294901760, %v509_v5 }
  0xeb   :  { %1037 = vmatpush.msrb.mxu3 %v1903_v41  ;;  %v956_v7 = vsub.f32 %v954_v36, %v955_v55 }
  0xec   :  { %511 = vmatmul.f32.vlgmr.msrb.gmra.mxu2 %v510_v40  ;;  %811 = vmatmul.f32.vlgmr.msra.gmra.mxu3 %v506_v18  ;;  %v968_v40 = vsub.f32 %v966_v24, %v967_v44 }
  0xed   :  { %978 = vmatpush.msrb.mxu2 %v1910_v57  ;;  %1039 = vmatpush.msrb.mxu3 %v1905_v9  ;;  %v957_v10 = vand.u32 4294901760, %v956_v7 }
  0xee   :  { %v969_v56 = vand.u32 4294901760, %v968_v40 }
  0xef   :  { %981 = vmatpush.msrb.mxu2 %v1913_v19  ;;  %1041 = vmatpush.msrb.mxu3 %v1907_v43 }
  0xf0   :  { %958 = vmatpush.msrb.mxu1 %v957_v10 }
  0xf1   :  { %984 = vmatpush.msrb.mxu2 %v1916_v11  ;;  %1043 = vmatpush.msrb.mxu3 %v1919_v51 }
  0xf3   :  { %987 = vmatpush.msrb.mxu2 %v1922_v37  ;;  %1045 = vmatpush.msrb.mxu3 %v1930_v48 }
  0xf4   :  { %774 = vmatmul.f32.vlgmr.msra.gmra.mxu2 %v506_v18  ;;  %v862_v18 = vand.u32 4294901760, %v817_v35 }
  0xf5   :  { %990 = vmatpush.msrb.mxu2 %v1925_v17  ;;  %1047 = vmatpush.msrb.mxu3 %v1964_v60 }
  0xf6   :  { %v960_v62 = vsub.f32 %v817_v35, %v862_v18  ;;  %863 = vmatpush.msrb.mxu0 %v862_v18 }
  0xf7   :  { %993 = vmatpush.msrb.mxu2 %v1928_v38  ;;  %1049 = vmatpush.msrb.mxu3 %v1966_v31 }
  0xf8   :  { %v961_v30 = vand.u32 4294901760, %v960_v62  ;;  %865 = vmatpush.msrb.mxu0 %v864_v6 }
  0xf9   :  { %996 = vmatpush.msrb.mxu2 %v1938_v42  ;;  %1051 = vmatpush.msrb.mxu3 %v1972_v34 }
  0xfa   :  { %1072 = vmatpush.msra.mxu0 %v877_v22  ;;  %v962_v5 = vsub.f32 %v960_v62, %v961_v30 }
  0xfb   :  { %999 = vmatpush.msrb.mxu2 %v1953_v28  ;;  %1053 = vmatpush.msrb.mxu3 %v1981_v16 }
  0xfc   :  { %1076 = vmatpush.msra.mxu0 %v883_v47  ;;  %v963_v21 = vand.u32 4294901760, %v962_v5 }
  0xfd   :  { %1002 = vmatpush.msrb.mxu2 %v1975_v15  ;;  %1055 = vmatpush.msrb.mxu3 %v1991_v61 }
  0xfe   :  { %1080 = vmatpush.msra.mxu0 %v889_v14  ;;  %964 = vmatpush.msrb.mxu1 %v963_v21 }
  0xff   :  { %1005 = vmatpush.msrb.mxu2 %v1979_v23  ;;  %1057 = vmatpush.msrb.mxu3 %v860_v32 }
 0x100   :  { %1084 = vmatpush.msra.mxu0 %v895_v3  ;;  %970 = vmatpush.msrb.mxu1 %v969_v56 }
 0x101   :  { %1008 = vmatpush.msrb.mxu2 %v1989_v59  ;;  %1059 = vmatpush.msrb.mxu3 %v862_v18 }
 0x102   :  { %1139 = vmatpush.msra.mxu1 %v1897_v4  ;;  %1088 = vmatpush.msra.mxu0 %v901_v49  ;;  %v1204_v4 = vld [vmem:[#allocation5 + $0x1] ss:$0 sm:$0xff]  ;;  %v1205_v49 = vld [vmem:[#allocation5 + $0x2] ss:$0 sm:$0xff] }
 0x103   :  { %1011 = vmatpush.msrb.mxu2 %v1999_v29  ;;  %1061 = vmatpush.msrb.mxu3 %v864_v6 }
 0x104   :  { %1141 = vmatpush.msra.mxu1 %v1899_v25  ;;  %1092 = vmatpush.msra.mxu0 %v907_v63 }
 0x105   :  { %1014 = vmatpush.msrb.mxu2 %v2008_v53 }
 0x106   :  { %1143 = vmatpush.msra.mxu1 %v1901_v39  ;;  %1096 = vmatpush.msra.mxu0 %v913_v54 }
 0x107   :  { %1017 = vmatpush.msrb.mxu2 %v954_v36 }
 0x108   :  { %1145 = vmatpush.msra.mxu1 %v1903_v41  ;;  %1100 = vmatpush.msra.mxu0 %v919_v1 }
 0x109   :  { %1020 = vmatpush.msrb.mxu2 %v960_v62 }
 0x10a   :  { %1147 = vmatpush.msra.mxu1 %v1905_v9  ;;  %1104 = vmatpush.msra.mxu0 %v925_v27 }
 0x10b   :  { %1023 = vmatpush.msrb.mxu2 %v966_v24 }
 0x10c   :  { %1149 = vmatpush.msra.mxu1 %v1907_v43  ;;  %1108 = vmatpush.msra.mxu0 %v931_v13 }
 0x10e   :  { %1151 = vmatpush.msra.mxu1 %v1919_v51  ;;  %1112 = vmatpush.msra.mxu0 %v937_v45 }
 0x110   :  { %1153 = vmatpush.msra.mxu1 %v1930_v48  ;;  %1116 = vmatpush.msra.mxu0 %v943_v46 }
 0x112   :  { %1155 = vmatpush.msra.mxu1 %v1964_v60  ;;  %1120 = vmatpush.msra.mxu0 %v949_v52 }
 0x114   :  { %1157 = vmatpush.msra.mxu1 %v1966_v31  ;;  %1124 = vmatpush.msra.mxu0 %v955_v55 }
 0x116   :  { %1159 = vmatpush.msra.mxu1 %v1972_v34  ;;  %1128 = vmatpush.msra.mxu0 %v961_v30 }
 0x118   :  { %1161 = vmatpush.msra.mxu1 %v1981_v16  ;;  %1132 = vmatpush.msra.mxu0 %v967_v44 }
 0x11a   :  { %1163 = vmatpush.msra.mxu1 %v1991_v61 }
 0x11c   :  { %1165 = vmatpush.msra.mxu1 %v860_v32 }
 0x11e   :  { %1167 = vmatpush.msra.mxu1 %v862_v18 }
 0x120   :  { %1169 = vmatpush.msra.mxu1 %v864_v6 }
 0x163   :  { %v667_v43 = vpop.f32.mrf.mxu0 }
 0x165   :  { %v706_v19 = vpop.f32.mrf.mxu1 }
 0x167   :  { %v613_v25 = vpop.f32.mrf.mxu3 }
 0x16f   :  { %v512_v39 = vpop.f32.mrf.mxu2  ;;  %v812_v17 = vpop.f32.mrf.mxu3 }
 0x170   :  { %v513_v41 = vadd.f32 %v1204_v4, %v512_v39 }
 0x172   :  { %v614_v9 = vadd.f32 %v613_v25, %v513_v41 }
 0x174   :  { %v668_v57 = vadd.f32 %v667_v43, %v614_v9 }
 0x176   :  { %v707_v11 = vadd.f32 %v706_v19, %v668_v57 }
 0x177   :  { %v775_v51 = vpop.f32.mrf.mxu2 }
 0x178   :  { %v776_v37 = vadd.f32 %v775_v51, %v707_v11 }
 0x17a   :  { %v813_v38 = vadd.f32 %v812_v17, %v776_v37 }
 0x17c   :  { %v815_v48 = vmax.f32 %v813_v38, 0.0 }
 0x17e   :  { %v866_v22 = vand.u32 4294901760, %v815_v48 }
 0x180   :  { %v867_v47 = vsub.f32 %v815_v48, %v866_v22  ;;  %972 = vmatmul.f32.vlgmr.msrb.gmra.mxu1 %v866_v22 }
 0x182   :  { %1026 = vmatmul.f32.vlgmr.msrb.gmra.mxu2 %v867_v47  ;;  %v868_v14 = vand.u32 4294901760, %v867_v47 }
 0x184   :  { %1065 = vmatmul.f32.vlgmr.msrb.gmra.mxu3 %v868_v14  ;;  %v869_v3 = vsub.f32 %v867_v47, %v868_v14 }
 0x186   :  { %v870_v42 = vand.u32 4294901760, %v869_v3 }
 0x188   :  { %871 = vmatmul.f32.vlgmr.msrb.gmra.mxu0 %v870_v42  ;;  %1171 = vmatmul.f32.vlgmr.msra.gmra.mxu1 %v866_v22 }
 0x190   :  { %1134 = vmatmul.f32.vlgmr.msra.gmra.mxu0 %v866_v22 }
 0x1fd   :  { %v973_v63 = vpop.f32.mrf.mxu1 }
 0x205   :  { %v872_v28 = vpop.f32.mrf.mxu0  ;;  %v1027_v31 = vpop.f32.mrf.mxu2 }
 0x206   :  { %v873_v54 = vadd.f32 %v1205_v49, %v872_v28  ;;  %v1172_v27 = vpop.f32.mrf.mxu1 }
 0x207   :  { %v1066_v34 = vpop.f32.mrf.mxu3 }
 0x208   :  { %v974_v60 = vadd.f32 %v973_v63, %v873_v54 }
 0x20a   :  { %v1028_v1 = vadd.f32 %v1027_v31, %v974_v60 }
 0x20c   :  { %v1067_v15 = vadd.f32 %v1066_v34, %v1028_v1 }
 0x20d   :  { %v1135_v23 = vpop.f32.mrf.mxu0 }
 0x20e   :  { %v1136_v16 = vadd.f32 %v1135_v23, %v1067_v15 }
 0x210   :  { %v1173_v59 = vadd.f32 %v1172_v27, %v1136_v16 }
 0x212   :  { %1175 = vst [vmem:[#allocation11] sm:$0xff] %v1173_v59 }
 0x213   :  { %1186 = dma.vmem_to_hbm [thread:$0]  %s1182_s4, 128, %s1184_s19, [#allocation4]  }
 0x214   :  { %1356 = dma.done.wait [#allocation4], 128  }
 0x215   :  { %1357 = vsyncadd [#allocation4], 4294967168 }
 0x216   :  { %1191 = vsyncpa [#allocation3], 1 }
 0x217   :  { %1192 = vsyncpa [#allocation6], 1 }
 0x218   :  { %1193 = vsyncpa [#allocation9], 1 }
 0x219   :  { %1194 = vsyncpa [#allocation4], 1 }

// kernel: tpu_custom_call.1
= control target key start
LH: loop header
LB: loop body
LE: loop exit
PB: predicated region body
PF: predicated region fallthrough
CT: control target
= control target key end

     0   :  { %10 = vsyncpa [#allocation3], 0  ;;  %s2095_s0 = inlined_call_operand.hbm [shape: f32[8,128], index: 0, kind: input, shape index: {}]   ;;  %s2096_s1 = inlined_call_operand.hbm [shape: f32[3,128], index: 1, kind: input, shape index: {}]   ;;  %s2097_s2 = inlined_call_operand.hbm [shape: f32[128,128], index: 2, kind: input, shape index: {}]   ;;  %s2098_s3 = inlined_call_operand.hbm [shape: f32[128,128], index: 3, kind: input, shape index: {}]   ;;  %s2099_s4 = inlined_call_operand.hbm [shape: f32[128,128], index: 4, kind: input, shape index: {}]   ;;  %s2100_s5 = inlined_call_operand.hbm [shape: f32[8,128], index: 5, kind: output, shape index: {}]  }
   0x1   :  { %11 = vsyncpa [#allocation6], 0 }
   0x2   :  { %12 = vsyncpa [#allocation9], 0  ;;  %s30_s20 = sshll.u32 %s2096_s1, 4  ;;  %s31_s20 = int_to_ptr.hbm [resolvable:$true] %s30_s20 }
   0x3   :  { %13 = vsyncpa [#allocation4], 0  ;;  %s1358_s21 = smov [#allocation5]   ;;  %s53_s25 = sshll.u32 %s2098_s3, 4  ;;  %s54_s25 = int_to_ptr.hbm [resolvable:$true] %s53_s25 }
   0x4   :  { %s32_s22 = sshll.u32 %s1358_s21, 4  ;;  %s1359_s26 = smov [#allocation8]   ;;  %s33_s22 = int_to_ptr.vmem [resolvable:$true] %s32_s22 }
   0x5   :  { %35 = dma.hbm_to_vmem [thread:$0]  %s31_s20, 64, %s33_s22, [#allocation6]  }
   0x6   :  { %s55_s27 = sshll.u32 %s1359_s26, 4  ;;  %s19_s30 = sshll.u32 %s2095_s0, 4  ;;  %s56_s27 = int_to_ptr.vmem [resolvable:$true] %s55_s27  ;;  %s20_s30 = int_to_ptr.hbm [resolvable:$true] %s19_s30 }
   0x7   :  { %s1360_s1 = smov 128   ;;  %s1361_s6 = smov 8  }
   0x8   :  { %61 = dma.hbm_to_vmem [thread:$0]  %s54_s25, 2048, %s56_s27, [#allocation9], %s1360_s1, %s1360_s1, %s1361_s6  }
   0x9   :  { %s40_s9 = sshll.u32 %s2097_s2, 4  ;;  %s1362_s10 = smov [#allocation2]   ;;  %s41_s9 = int_to_ptr.hbm [resolvable:$true] %s40_s9 }
   0xa   :  { %s21_s11 = sshll.u32 %s1362_s10, 4  ;;  %s1363_s3 = smov [#allocation7]   ;;  %s22_s11 = int_to_ptr.vmem [resolvable:$true] %s21_s11 }
   0xb   :  { %24 = dma.hbm_to_vmem [thread:$0]  %s20_s30, 128, %s22_s11, [#allocation3]  }
   0xc   :  { %s42_s12 = sshll.u32 %s1363_s3, 4  ;;  %s66_s0 = sshll.u32 %s2099_s4, 4  ;;  %s43_s12 = int_to_ptr.vmem [resolvable:$true] %s42_s12  ;;  %s67_s0 = int_to_ptr.hbm [resolvable:$true] %s66_s0 }
   0xd   :  { %48 = dma.hbm_to_vmem [thread:$0]  %s41_s9, 2048, %s43_s12, [#allocation6], %s1360_s1, %s1360_s1, %s1361_s6  }
   0xe   :  { %s1364_s15 = smov [#allocation10]  }
   0xf   :  { %s68_s16 = sshll.u32 %s1364_s15, 4  ;;  %s69_s16 = int_to_ptr.vmem [resolvable:$true] %s68_s16 }
  0x10   :  { %74 = dma.hbm_to_vmem [thread:$0]  %s67_s0, 2048, %s69_s16, [#allocation9], %s1360_s1, %s1360_s1, %s1361_s6  }
  0x11   :  { %1350 = dma.done.wait [#allocation3], 128  }
  0x12   :  { %1351 = vsyncadd [#allocation3], 4294967168 }
  0x13   :  { %1352 = dma.done.wait [#allocation6], 2112  }
  0x14   :  { %1353 = vsyncadd [#allocation6], 4294965184 }
  0x15   :  { %1354 = dma.done.wait [#allocation9], 4096  }
  0x16   :  { %1355 = vsyncadd [#allocation9], 4294963200  ;;  %v111_v0 = vld [vmem:[#allocation7 + $0x78] sm:$0xff]  ;;  %v110_v1 = vld [vmem:[#allocation7 + $0x70] sm:$0xff]  ;;  %s1365_s2 = smov [#allocation11]   ;;  %s1183_s19 = sshll.u32 %s2100_s5, 4  ;;  %s1184_s19 = int_to_ptr.hbm [resolvable:$true] %s1183_s19 }
  0x17   :  { %v109_v2 = vld [vmem:[#allocation7 + $0x68] sm:$0xff]  ;;  %v1411_v3 = vand.u32 4294901760, %v111_v0  ;;  %v1413_v4 = vand.u32 4294901760, %v110_v1  ;;  %v108_v6 = vld [vmem:[#allocation7 + $0x60] sm:$0xff]  ;;  %v107_v7 = vld [vmem:[#allocation7 + $0x58] sm:$0xff]  ;;  %s1181_s4 = sshll.u32 %s1365_s2, 4  ;;  %s1182_s4 = int_to_ptr.vmem [resolvable:$true] %s1181_s4 }
  0x18   :  { %v1415_v5 = vand.u32 4294901760, %v109_v2  ;;  %v106_v8 = vld [vmem:[#allocation7 + $0x50] sm:$0xff]  ;;  %v1417_v9 = vand.u32 4294901760, %v108_v6  ;;  %v1419_v10 = vand.u32 4294901760, %v107_v7  ;;  %v105_v12 = vld [vmem:[#allocation7 + $0x48] sm:$0xff]  ;;  %v104_v13 = vld [vmem:[#allocation7 + $0x40] sm:$0xff] }
  0x19   :  { %v1421_v11 = vand.u32 4294901760, %v106_v8  ;;  %115 = vmatpush.msra.mxu0 %v1411_v3  ;;  %v1425_v14 = vsub.f32 %v111_v0, %v1411_v3  ;;  %v1428_v15 = vsub.f32 %v110_v1, %v1413_v4  ;;  %v1433_v17 = vand.u32 4294901760, %v105_v12  ;;  %311 = vmatpush.msra.mxu3 %v1411_v3  ;;  %v103_v21 = vld [vmem:[#allocation7 + $0x38] sm:$0xff]  ;;  %v102_v34 = vld [vmem:[#allocation7 + $0x30] sm:$0xff]  ;;  %v101_v35 = vld [vmem:[#allocation7 + $0x28] sm:$0xff] }
  0x1a   :  { %v1431_v16 = vsub.f32 %v109_v2, %v1415_v5  ;;  %v1437_v18 = vsub.f32 %v108_v6, %v1417_v9  ;;  %v1440_v19 = vsub.f32 %v107_v7, %v1419_v10  ;;  %v1442_v20 = vand.u32 4294901760, %v104_v13  ;;  %v100_v42 = vld [vmem:[#allocation7 + $0x20] sm:$0xff]  ;;  %v99_v47 = vld [vmem:[#allocation7 + $0x18] sm:$0xff]  ;;  %v98_v53 = vld [vmem:[#allocation7 + $0x10] sm:$0xff] }
  0x1b   :  { %117 = vmatpush.msra.mxu0 %v1413_v4  ;;  %v157_v22 = vand.u32 4294901760, %v1425_v14  ;;  %v163_v23 = vand.u32 4294901760, %v1428_v15  ;;  %v1449_v25 = vsub.f32 %v106_v8, %v1421_v11  ;;  %258 = vmatpush.msra.mxu2 %v1425_v14  ;;  %v1455_v28 = vsub.f32 %v105_v12, %v1433_v17  ;;  %v97_v61 = vld [vmem:[#allocation7 + $0x8] sm:$0xff]  ;;  %v96_v2 = vld [vmem:[#allocation7] sm:$0xff] }
  0x1c   :  { %v169_v24 = vand.u32 4294901760, %v1431_v16  ;;  %v175_v26 = vand.u32 4294901760, %v1437_v18  ;;  %v181_v27 = vand.u32 4294901760, %v1440_v19  ;;  %313 = vmatpush.msra.mxu3 %v1413_v4  ;;  %v1468_v32 = vand.u32 4294901760, %v103_v21 }
  0x1d   :  { %v158_v29 = vsub.f32 %v1425_v14, %v157_v22  ;;  %119 = vmatpush.msra.mxu0 %v1415_v5  ;;  %v164_v30 = vsub.f32 %v1428_v15, %v163_v23  ;;  %261 = vmatpush.msra.mxu2 %v1428_v15  ;;  %v1472_v33 = vsub.f32 %v104_v13, %v1442_v20  ;;  %v187_v39 = vand.u32 4294901760, %v1449_v25  ;;  %v471_v14 = vld [vmem:[#allocation8 + $0x78] sm:$0xff] }
  0x1e   :  { %v170_v31 = vsub.f32 %v1431_v16, %v169_v24  ;;  %315 = vmatpush.msra.mxu3 %v1415_v5  ;;  %v176_v38 = vsub.f32 %v1437_v18, %v175_v26  ;;  %v182_v40 = vsub.f32 %v1440_v19, %v181_v27  ;;  %v193_v41 = vand.u32 4294901760, %v1455_v28 }
  0x1f   :  { %v159_v36 = vand.u32 4294901760, %v158_v29  ;;  %v165_v37 = vand.u32 4294901760, %v164_v30  ;;  %121 = vmatpush.msra.mxu0 %v1417_v9  ;;  %264 = vmatpush.msra.mxu2 %v1431_v16  ;;  %v1487_v44 = vand.u32 4294901760, %v102_v34  ;;  %v1490_v45 = vsub.f32 %v103_v21, %v1468_v32  ;;  %v95_v29 = vld [vmem:[#allocation2] sm:$0xff] }
  0x20   :  { %317 = vmatpush.msra.mxu3 %v1417_v9  ;;  %v171_v43 = vand.u32 4294901760, %v170_v31  ;;  %v1492_v46 = vand.u32 4294901760, %v101_v35  ;;  %v199_v48 = vand.u32 4294901760, %v1472_v33  ;;  %v177_v49 = vand.u32 4294901760, %v176_v38 }
  0x21   :  { %160 = vmatpush.msra.mxu1 %v159_v36  ;;  %123 = vmatpush.msra.mxu0 %v1419_v10  ;;  %v188_v50 = vsub.f32 %v1449_v25, %v187_v39  ;;  %v1502_v51 = vsub.f32 %v102_v34, %v1487_v44  ;;  %v1504_v52 = vand.u32 4294901760, %v100_v42  ;;  %v1506_v54 = vand.u32 4294901760, %v99_v47 }
  0x22   :  { %267 = vmatpush.msra.mxu2 %v1437_v18  ;;  %319 = vmatpush.msra.mxu3 %v1419_v10  ;;  %v183_v55 = vand.u32 4294901760, %v182_v40  ;;  %v194_v56 = vsub.f32 %v1455_v28, %v193_v41  ;;  %v205_v57 = vand.u32 4294901760, %v1490_v45  ;;  %v1516_v58 = vsub.f32 %v101_v35, %v1492_v46 }
  0x23   :  { %166 = vmatpush.msra.mxu1 %v165_v37  ;;  %125 = vmatpush.msra.mxu0 %v1421_v11  ;;  %v200_v59 = vsub.f32 %v1472_v33, %v199_v48  ;;  %v1521_v60 = vand.u32 4294901760, %v98_v53  ;;  %v189_v62 = vand.u32 4294901760, %v188_v50  ;;  %v211_v63 = vand.u32 4294901760, %v1502_v51 }
  0x24   :  { %270 = vmatpush.msra.mxu2 %v1440_v19  ;;  %321 = vmatpush.msra.mxu3 %v1421_v11  ;;  %v1528_v0 = vsub.f32 %v100_v42, %v1504_v52  ;;  %v1531_v1 = vsub.f32 %v99_v47, %v1506_v54  ;;  %v195_v6 = vand.u32 4294901760, %v194_v56  ;;  %v206_v7 = vsub.f32 %v1490_v45, %v205_v57  ;;  %v464_v19 = vld [vmem:[#allocation8 + $0x40] sm:$0xff] }
  0x25   :  { %172 = vmatpush.msra.mxu1 %v171_v43  ;;  %127 = vmatpush.msra.mxu0 %v1433_v17  ;;  %v217_v8 = vand.u32 4294901760, %v1516_v58  ;;  %v1540_v12 = vand.u32 4294901760, %v97_v61  ;;  %v201_v13 = vand.u32 4294901760, %v200_v59  ;;  %v1543_v21 = vsub.f32 %v98_v53, %v1521_v60 }
  0x26   :  { %273 = vmatpush.msra.mxu2 %v1449_v25  ;;  %323 = vmatpush.msra.mxu3 %v1433_v17  ;;  %v212_v30 = vsub.f32 %v1502_v51, %v211_v63  ;;  %v223_v31 = vand.u32 4294901760, %v1528_v0  ;;  %v1552_v34 = vand.u32 4294901760, %v96_v2  ;;  %v1554_v35 = vand.u32 4294901760, %v95_v29 }
  0x27   :  { %178 = vmatpush.msra.mxu1 %v177_v49  ;;  %129 = vmatpush.msra.mxu0 %v1442_v20  ;;  %v229_v36 = vand.u32 4294901760, %v1531_v1  ;;  %v207_v37 = vand.u32 4294901760, %v206_v7  ;;  %v218_v38 = vsub.f32 %v1516_v58, %v217_v8  ;;  %v1564_v40 = vsub.f32 %v97_v61, %v1540_v12 }
  0x28   :  { %276 = vmatpush.msra.mxu2 %v1455_v28  ;;  %325 = vmatpush.msra.mxu3 %v1442_v20  ;;  %v147_v42 = vsub.f32 %v95_v29, %v1554_v35  ;;  %v213_v43 = vand.u32 4294901760, %v212_v30  ;;  %v224_v47 = vsub.f32 %v1528_v0, %v223_v31  ;;  %v235_v49 = vand.u32 4294901760, %v1543_v21 }
  0x29   :  { %184 = vmatpush.msra.mxu1 %v183_v55  ;;  %131 = vmatpush.msra.mxu0 %v1468_v32  ;;  %v1575_v50 = vsub.f32 %v96_v2, %v1552_v34  ;;  %v219_v53 = vand.u32 4294901760, %v218_v38  ;;  %v230_v55 = vsub.f32 %v1531_v1, %v229_v36  ;;  %v241_v56 = vand.u32 4294901760, %v1564_v40 }
  0x2a   :  { %279 = vmatpush.msra.mxu2 %v1472_v33  ;;  %327 = vmatpush.msra.mxu3 %v1468_v32  ;;  %v148_v59 = vand.u32 4294901760, %v147_v42  ;;  %v225_v61 = vand.u32 4294901760, %v224_v47  ;;  %v469_v47 = vld [vmem:[#allocation8 + $0x68] sm:$0xff]  ;;  %v1617_v15 = vand.u32 4294901760, %v471_v14  ;;  %v463_v33 = vld [vmem:[#allocation8 + $0x38] sm:$0xff] }
  0x2b   :  { %190 = vmatpush.msra.mxu1 %v189_v62  ;;  %133 = vmatpush.msra.mxu0 %v1487_v44  ;;  %v236_v62 = vsub.f32 %v1543_v21, %v235_v49  ;;  %v247_v2 = vand.u32 4294901760, %v1575_v50  ;;  %v242_v7 = vsub.f32 %v1564_v40, %v241_v56  ;;  %v1621_v16 = vand.u32 4294901760, %v469_v47 }
  0x2c   :  { %282 = vmatpush.msra.mxu2 %v1490_v45  ;;  %329 = vmatpush.msra.mxu3 %v1487_v44  ;;  %v1696_v45 = vand.u32 4294901760, %v463_v33 }
  0x2d   :  { %196 = vmatpush.msra.mxu1 %v195_v6  ;;  %135 = vmatpush.msra.mxu0 %v1492_v46  ;;  %v231_v6 = vand.u32 4294901760, %v230_v55  ;;  %v237_v29 = vand.u32 4294901760, %v236_v62  ;;  %v248_v30 = vsub.f32 %v1575_v50, %v247_v2 }
  0x2e   :  { %285 = vmatpush.msra.mxu2 %v1502_v51  ;;  %331 = vmatpush.msra.mxu3 %v1492_v46  ;;  %v1711_v51 = vsub.f32 %v463_v33, %v1696_v45 }
  0x2f   :  { %202 = vmatpush.msra.mxu1 %v201_v13  ;;  %137 = vmatpush.msra.mxu0 %v1504_v52  ;;  %v149_v13 = vsub.f32 %v147_v42, %v148_v59 }
  0x30   :  { %288 = vmatpush.msra.mxu2 %v1516_v58  ;;  %333 = vmatpush.msra.mxu3 %v1504_v52 }
  0x31   :  { %208 = vmatpush.msra.mxu1 %v207_v37  ;;  %139 = vmatpush.msra.mxu0 %v1506_v54  ;;  %v243_v37 = vand.u32 4294901760, %v242_v7  ;;  %v150_v38 = vand.u32 4294901760, %v149_v13  ;;  %v1657_v13 = vand.u32 4294901760, %v464_v19 }
  0x32   :  { %291 = vmatpush.msra.mxu2 %v1528_v0  ;;  %335 = vmatpush.msra.mxu3 %v1506_v54  ;;  %v457_v0 = vld [vmem:[#allocation8 + $0x8] sm:$0xff] }
  0x33   :  { %214 = vmatpush.msra.mxu1 %v213_v43  ;;  %141 = vmatpush.msra.mxu0 %v1521_v60  ;;  %v249_v43 = vand.u32 4294901760, %v248_v30 }
  0x34   :  { %294 = vmatpush.msra.mxu2 %v1531_v1  ;;  %337 = vmatpush.msra.mxu3 %v1521_v60  ;;  %v456_v1 = vld [vmem:[#allocation8] sm:$0xff] }
  0x35   :  { %220 = vmatpush.msra.mxu1 %v219_v53  ;;  %143 = vmatpush.msra.mxu0 %v1540_v12  ;;  %v466_v53 = vld [vmem:[#allocation8 + $0x50] sm:$0xff] }
  0x36   :  { %297 = vmatpush.msra.mxu2 %v1543_v21  ;;  %339 = vmatpush.msra.mxu3 %v1540_v12  ;;  %v1628_v55 = vand.u32 4294901760, %v466_v53 }
  0x37   :  { %226 = vmatpush.msra.mxu1 %v225_v61  ;;  %145 = vmatpush.msra.mxu0 %v1552_v34  ;;  %v1640_v61 = vsub.f32 %v469_v47, %v1621_v16 }
  0x38   :  { %300 = vmatpush.msra.mxu2 %v1564_v40  ;;  %341 = vmatpush.msra.mxu3 %v1552_v34  ;;  %v1662_v30 = vsub.f32 %v466_v53, %v1628_v55 }
  0x39   :  { %352 = vmatpush.msrb.mxu0 %v157_v22  ;;  %232 = vmatpush.msra.mxu1 %v231_v6  ;;  %v470_v22 = vld [vmem:[#allocation8 + $0x70] sm:$0xff]  ;;  %v529_v7 = vand.u32 4294901760, %v1640_v61 }
  0x3a   :  { %303 = vmatpush.msra.mxu2 %v1575_v50  ;;  %345 = vmatmul.f32.vlgmr.msra.gmra.mxu3 %v148_v59 }
  0x3b   :  { %356 = vmatpush.msrb.mxu0 %v163_v23  ;;  %238 = vmatpush.msra.mxu1 %v237_v29  ;;  %v1619_v23 = vand.u32 4294901760, %v470_v22 }
  0x3c   :  { %306 = vmatmul.f32.vlgmr.msra.gmra.mxu2 %v147_v42  ;;  %151 = vmatmul.f32.vlgmr.msra.gmra.mxu0 %v150_v38  ;;  %v467_v42 = vld [vmem:[#allocation8 + $0x58] sm:$0xff] }
  0x3d   :  { %360 = vmatpush.msrb.mxu0 %v169_v24  ;;  %244 = vmatpush.msra.mxu1 %v243_v37  ;;  %v468_v24 = vld [vmem:[#allocation8 + $0x60] sm:$0xff]  ;;  %v1637_v59 = vsub.f32 %v470_v22, %v1619_v23  ;;  %v530_v37 = vsub.f32 %v1640_v61, %v529_v7 }
  0x3e   :  { %v1624_v18 = vand.u32 4294901760, %v468_v24  ;;  %475 = vmatpush.msrb.mxu2 %v1617_v15 }
  0x3f   :  { %364 = vmatpush.msrb.mxu0 %v175_v26  ;;  %250 = vmatpush.msra.mxu1 %v249_v43  ;;  %v1626_v26 = vand.u32 4294901760, %v467_v42  ;;  %v1685_v43 = vsub.f32 %v464_v19, %v1657_v13  ;;  %v531_v53 = vand.u32 4294901760, %v530_v37 }
  0x40   :  { %252 = vmatmul.f32.vlgmr.msra.gmra.mxu1 %v1554_v35  ;;  %v1645_v6 = vsub.f32 %v468_v24, %v1624_v18  ;;  %477 = vmatpush.msrb.mxu2 %v1619_v23  ;;  %v547_v24 = vand.u32 4294901760, %v1662_v30 }
  0x41   :  { %419 = vmatpush.msrb.mxu1 %v1411_v3  ;;  %368 = vmatpush.msrb.mxu0 %v181_v27  ;;  %v465_v3 = vld [vmem:[#allocation8 + $0x48] sm:$0xff]  ;;  %v1634_v27 = vsub.f32 %v471_v14, %v1617_v15 }
  0x42   :  { %v1642_v62 = vand.u32 4294901760, %v465_v3  ;;  %v535_v29 = vand.u32 4294901760, %v1645_v6  ;;  %479 = vmatpush.msrb.mxu2 %v1621_v16  ;;  %v461_v14 = vld [vmem:[#allocation8 + $0x28] sm:$0xff] }
  0x43   :  { %421 = vmatpush.msrb.mxu1 %v1413_v4  ;;  %372 = vmatpush.msrb.mxu0 %v187_v39  ;;  %v1649_v4 = vsub.f32 %v467_v42, %v1626_v26  ;;  %v517_v25 = vand.u32 4294901760, %v1634_v27  ;;  %v523_v39 = vand.u32 4294901760, %v1637_v59  ;;  %v460_v42 = vld [vmem:[#allocation8 + $0x20] sm:$0xff]  ;;  %v1704_v19 = vand.u32 4294901760, %v461_v14 }
  0x44   :  { %v536_v47 = vsub.f32 %v1645_v6, %v535_v29  ;;  %481 = vmatpush.msrb.mxu2 %v1624_v18 }
  0x45   :  { %423 = vmatpush.msrb.mxu1 %v1415_v5  ;;  %376 = vmatpush.msrb.mxu0 %v193_v41  ;;  %v518_v5 = vsub.f32 %v1634_v27, %v517_v25  ;;  %v524_v28 = vsub.f32 %v1637_v59, %v523_v39  ;;  %v1674_v41 = vsub.f32 %v465_v3, %v1642_v62 }
  0x46   :  { %483 = vmatpush.msrb.mxu2 %v1626_v26 }
  0x47   :  { %425 = vmatpush.msrb.mxu1 %v1417_v9  ;;  %380 = vmatpush.msrb.mxu0 %v199_v48  ;;  %v541_v9 = vand.u32 4294901760, %v1649_v4  ;;  %v462_v48 = vld [vmem:[#allocation8 + $0x30] sm:$0xff]  ;;  %v519_v38 = vand.u32 4294901760, %v518_v5  ;;  %v525_v22 = vand.u32 4294901760, %v524_v28  ;;  %v537_v5 = vand.u32 4294901760, %v536_v47 }
  0x48   :  { %v548_v28 = vsub.f32 %v1662_v30, %v547_v24  ;;  %485 = vmatpush.msrb.mxu2 %v1628_v55 }
  0x49   :  { %427 = vmatpush.msrb.mxu1 %v1419_v10  ;;  %384 = vmatpush.msrb.mxu0 %v205_v57  ;;  %v553_v10 = vand.u32 4294901760, %v1674_v41  ;;  %v1698_v57 = vand.u32 4294901760, %v462_v48  ;;  %v542_v3 = vsub.f32 %v1649_v4, %v541_v9 }
  0x4a   :  { %520 = vmatpush.msrb.mxu3 %v519_v38  ;;  %v565_v38 = vand.u32 4294901760, %v1711_v51  ;;  %487 = vmatpush.msrb.mxu2 %v1642_v62 }
  0x4b   :  { %429 = vmatpush.msrb.mxu1 %v1421_v11  ;;  %388 = vmatpush.msrb.mxu0 %v211_v63  ;;  %v559_v11 = vand.u32 4294901760, %v1685_v43  ;;  %v459_v63 = vld [vmem:[#allocation8 + $0x18] sm:$0xff]  ;;  %v1718_v37 = vsub.f32 %v462_v48, %v1698_v57  ;;  %v554_v58 = vsub.f32 %v1674_v41, %v553_v10  ;;  %v543_v33 = vand.u32 4294901760, %v542_v3 }
  0x4c   :  { %526 = vmatpush.msrb.mxu3 %v525_v22  ;;  %v1731_v48 = vsub.f32 %v461_v14, %v1704_v19  ;;  %v1733_v22 = vand.u32 4294901760, %v459_v63  ;;  %489 = vmatpush.msrb.mxu2 %v1657_v13 }
  0x4d   :  { %431 = vmatpush.msrb.mxu1 %v1433_v17  ;;  %392 = vmatpush.msrb.mxu0 %v217_v8  ;;  %v1720_v17 = vand.u32 4294901760, %v460_v42  ;;  %v458_v8 = vld [vmem:[#allocation8 + $0x10] sm:$0xff]  ;;  %v571_v47 = vand.u32 4294901760, %v1718_v37 }
  0x4e   :  { %532 = vmatpush.msrb.mxu3 %v531_v53  ;;  %v1746_v53 = vand.u32 4294901760, %v458_v8  ;;  %v577_v3 = vand.u32 4294901760, %v1731_v48  ;;  %491 = vmatpush.msrb.mxu2 %v1696_v45 }
  0x4f   :  { %433 = vmatpush.msrb.mxu1 %v1442_v20  ;;  %396 = vmatpush.msrb.mxu0 %v223_v31  ;;  %v560_v20 = vsub.f32 %v1685_v43, %v559_v11  ;;  %v549_v31 = vand.u32 4294901760, %v548_v28  ;;  %v1744_v14 = vsub.f32 %v460_v42, %v1720_v17  ;;  %v1757_v42 = vsub.f32 %v459_v63, %v1733_v22 }
  0x50   :  { %538 = vmatpush.msrb.mxu3 %v537_v5  ;;  %v1759_v5 = vand.u32 4294901760, %v457_v0  ;;  %v572_v21 = vsub.f32 %v1718_v37, %v571_v47  ;;  %493 = vmatpush.msrb.mxu2 %v1698_v57  ;;  %v1770_v63 = vsub.f32 %v458_v8, %v1746_v53  ;;  %v1772_v28 = vand.u32 4294901760, %v456_v1 }
  0x51   :  { %435 = vmatpush.msrb.mxu1 %v1468_v32  ;;  %400 = vmatpush.msrb.mxu0 %v229_v36  ;;  %v555_v32 = vand.u32 4294901760, %v554_v58  ;;  %v566_v36 = vsub.f32 %v1711_v51, %v565_v38  ;;  %v578_v40 = vsub.f32 %v1731_v48, %v577_v3 }
  0x52   :  { %544 = vmatpush.msrb.mxu3 %v543_v33  ;;  %v1783_v58 = vsub.f32 %v457_v0, %v1759_v5  ;;  %495 = vmatpush.msrb.mxu2 %v1704_v19  ;;  %v1793_v8 = vsub.f32 %v456_v1, %v1772_v28 }
  0x53   :  { %437 = vmatpush.msrb.mxu1 %v1487_v44  ;;  %404 = vmatpush.msrb.mxu0 %v235_v49  ;;  %v561_v44 = vand.u32 4294901760, %v560_v20  ;;  %v583_v49 = vand.u32 4294901760, %v1744_v14 }
  0x54   :  { %550 = vmatpush.msrb.mxu3 %v549_v31  ;;  %v601_v20 = vand.u32 4294901760, %v1783_v58  ;;  %497 = vmatpush.msrb.mxu2 %v1720_v17  ;;  %v607_v31 = vand.u32 4294901760, %v1793_v8 }
  0x55   :  { %439 = vmatpush.msrb.mxu1 %v1492_v46  ;;  %408 = vmatpush.msrb.mxu0 %v241_v56  ;;  %v567_v46 = vand.u32 4294901760, %v566_v36  ;;  %v589_v56 = vand.u32 4294901760, %v1757_v42  ;;  %v584_v50 = vsub.f32 %v1744_v14, %v583_v49 }
  0x56   :  { %556 = vmatpush.msrb.mxu3 %v555_v32  ;;  %499 = vmatpush.msrb.mxu2 %v1733_v22  ;;  %v602_v32 = vsub.f32 %v1783_v58, %v601_v20 }
  0x57   :  { %441 = vmatpush.msrb.mxu1 %v1504_v52  ;;  %412 = vmatpush.msrb.mxu0 %v247_v2  ;;  %v573_v52 = vand.u32 4294901760, %v572_v21  ;;  %v595_v2 = vand.u32 4294901760, %v1770_v63  ;;  %v590_v33 = vsub.f32 %v1757_v42, %v589_v56  ;;  %v585_v0 = vand.u32 4294901760, %v584_v50 }
  0x58   :  { %414 = vmatmul.f32.vlgmr.msrb.gmra.mxu0 %v1554_v35  ;;  %562 = vmatpush.msrb.mxu3 %v561_v44 }
  0x59   :  { %443 = vmatpush.msrb.mxu1 %v1506_v54  ;;  %618 = vmatpush.msra.mxu0 %v1634_v27  ;;  %v579_v54 = vand.u32 4294901760, %v578_v40  ;;  %v822_v40 = vld [vmem:[#allocation10 + $0x30] sm:$0xff] }
  0x5a   :  { %568 = vmatpush.msrb.mxu3 %v567_v46  ;;  %501 = vmatpush.msrb.mxu2 %v1746_v53  ;;  %v823_v46 = vld [vmem:[#allocation10 + $0x38] sm:$0xff] }
  0x5b   :  { %445 = vmatpush.msrb.mxu1 %v1521_v60  ;;  %621 = vmatpush.msra.mxu0 %v1637_v59  ;;  %v596_v60 = vsub.f32 %v1770_v63, %v595_v2 }
  0x5c   :  { %574 = vmatpush.msrb.mxu3 %v573_v52  ;;  %503 = vmatpush.msrb.mxu2 %v1759_v5 }
  0x5d   :  { %447 = vmatpush.msrb.mxu1 %v1540_v12  ;;  %624 = vmatpush.msra.mxu0 %v1640_v61  ;;  %v591_v12 = vand.u32 4294901760, %v590_v33  ;;  %v597_v1 = vand.u32 4294901760, %v596_v60  ;;  %v831_v61 = vld [vmem:[#allocation10 + $0x78] sm:$0xff]  ;;  %v820_v33 = vld [vmem:[#allocation10 + $0x20] sm:$0xff]  ;;  %v1964_v60 = vand.u32 4294901760, %v823_v46 }
  0x5e   :  { %580 = vmatpush.msrb.mxu3 %v579_v54  ;;  %505 = vmatpush.msrb.mxu2 %v1772_v28 }
  0x5f   :  { %449 = vmatpush.msrb.mxu1 %v1552_v34  ;;  %627 = vmatpush.msra.mxu0 %v1645_v6  ;;  %v608_v34 = vsub.f32 %v1793_v8, %v607_v31  ;;  %v829_v6 = vld [vmem:[#allocation10 + $0x68] sm:$0xff] }
  0x60   :  { %451 = vmatmul.f32.vlgmr.msrb.gmra.mxu1 %v1554_v35  ;;  %586 = vmatpush.msrb.mxu3 %v585_v0  ;;  %v603_v35 = vand.u32 4294901760, %v602_v32 }
  0x61   :  { %671 = vmatpush.msra.mxu1 %v1617_v15  ;;  %630 = vmatpush.msra.mxu0 %v1649_v4  ;;  %v609_v36 = vand.u32 4294901760, %v608_v34  ;;  %v1897_v4 = vand.u32 4294901760, %v831_v61 }
  0x62   :  { %592 = vmatpush.msrb.mxu3 %v591_v12  ;;  %712 = vmatpush.msra.mxu2 %v517_v25 }
  0x63   :  { %673 = vmatpush.msra.mxu1 %v1619_v23  ;;  %633 = vmatpush.msra.mxu0 %v1662_v30 }
  0x64   :  { %598 = vmatpush.msrb.mxu3 %v597_v1  ;;  %716 = vmatpush.msra.mxu2 %v523_v39  ;;  %v1901_v39 = vand.u32 4294901760, %v829_v6 }
  0x65   :  { %675 = vmatpush.msra.mxu1 %v1621_v16  ;;  %636 = vmatpush.msra.mxu0 %v1674_v41 }
  0x66   :  { %604 = vmatpush.msrb.mxu3 %v603_v35  ;;  %720 = vmatpush.msra.mxu2 %v529_v7  ;;  %v828_v7 = vld [vmem:[#allocation10 + $0x60] sm:$0xff]  ;;  %v819_v35 = vld [vmem:[#allocation10 + $0x18] sm:$0xff] }
  0x67   :  { %677 = vmatpush.msra.mxu1 %v1624_v18  ;;  %639 = vmatpush.msra.mxu0 %v1685_v43  ;;  %v1903_v41 = vand.u32 4294901760, %v828_v7 }
  0x68   :  { %610 = vmatpush.msrb.mxu3 %v609_v36  ;;  %724 = vmatpush.msra.mxu2 %v535_v29  ;;  %v826_v29 = vld [vmem:[#allocation10 + $0x50] sm:$0xff] }
  0x69   :  { %679 = vmatpush.msra.mxu1 %v1626_v26  ;;  %642 = vmatpush.msra.mxu0 %v1711_v51  ;;  %v1907_v43 = vand.u32 4294901760, %v826_v29 }
  0x6a   :  { %779 = vmatpush.msra.mxu3 %v1617_v15  ;;  %728 = vmatpush.msra.mxu2 %v541_v9  ;;  %v1203_v15 = vld [vmem:[#allocation5] ss:$0 sm:$0xff] }
  0x6b   :  { %681 = vmatpush.msra.mxu1 %v1628_v55  ;;  %645 = vmatpush.msra.mxu0 %v1718_v37  ;;  %v1922_v37 = vsub.f32 %v828_v7, %v1903_v41 }
  0x6c   :  { %781 = vmatpush.msra.mxu3 %v1619_v23  ;;  %732 = vmatpush.msra.mxu2 %v547_v24  ;;  %v825_v24 = vld [vmem:[#allocation10 + $0x48] sm:$0xff] }
  0x6d   :  { %683 = vmatpush.msra.mxu1 %v1642_v62  ;;  %648 = vmatpush.msra.mxu0 %v1731_v48  ;;  %v1919_v51 = vand.u32 4294901760, %v825_v24 }
  0x6e   :  { %783 = vmatpush.msra.mxu3 %v1621_v16  ;;  %736 = vmatpush.msra.mxu2 %v553_v10  ;;  %v824_v10 = vld [vmem:[#allocation10 + $0x40] sm:$0xff] }
  0x6f   :  { %685 = vmatpush.msra.mxu1 %v1657_v13  ;;  %651 = vmatpush.msra.mxu0 %v1744_v14  ;;  %v1930_v48 = vand.u32 4294901760, %v824_v10 }
  0x70   :  { %785 = vmatpush.msra.mxu3 %v1624_v18  ;;  %740 = vmatpush.msra.mxu2 %v559_v11  ;;  %v1916_v11 = vsub.f32 %v829_v6, %v1901_v39 }
  0x71   :  { %687 = vmatpush.msra.mxu1 %v1696_v45  ;;  %654 = vmatpush.msra.mxu0 %v1757_v42  ;;  %v1938_v42 = vsub.f32 %v825_v24, %v1919_v51 }
  0x72   :  { %787 = vmatpush.msra.mxu3 %v1626_v26  ;;  %744 = vmatpush.msra.mxu2 %v565_v38  ;;  %v1928_v38 = vsub.f32 %v826_v29, %v1907_v43  ;;  %v889_v14 = vand.u32 4294901760, %v1916_v11 }
  0x73   :  { %689 = vmatpush.msra.mxu1 %v1698_v57  ;;  %657 = vmatpush.msra.mxu0 %v1770_v63  ;;  %v913_v54 = vand.u32 4294901760, %v1938_v42 }
  0x74   :  { %789 = vmatpush.msra.mxu3 %v1628_v55  ;;  %748 = vmatpush.msra.mxu2 %v571_v47  ;;  %v890_v21 = vsub.f32 %v1916_v11, %v889_v14  ;;  %v907_v63 = vand.u32 4294901760, %v1928_v38 }
  0x75   :  { %691 = vmatpush.msra.mxu1 %v1704_v19  ;;  %660 = vmatpush.msra.mxu0 %v1783_v58 }
  0x76   :  { %791 = vmatpush.msra.mxu3 %v1642_v62  ;;  %752 = vmatpush.msra.mxu2 %v577_v3  ;;  %v830_v62 = vld [vmem:[#allocation10 + $0x70] sm:$0xff]  ;;  %v895_v3 = vand.u32 4294901760, %v1922_v37  ;;  %v908_v32 = vsub.f32 %v1928_v38, %v907_v63 }
  0x77   :  { %693 = vmatpush.msra.mxu1 %v1720_v17  ;;  %663 = vmatpush.msra.mxu0 %v1793_v8  ;;  %v1899_v25 = vand.u32 4294901760, %v830_v62 }
  0x78   :  { %793 = vmatpush.msra.mxu3 %v1657_v13  ;;  %756 = vmatpush.msra.mxu2 %v583_v49  ;;  %v827_v13 = vld [vmem:[#allocation10 + $0x58] sm:$0xff]  ;;  %v896_v50 = vsub.f32 %v1922_v37, %v895_v3  ;;  %v909_v6 = vand.u32 4294901760, %v908_v32 }
  0x79   :  { %695 = vmatpush.msra.mxu1 %v1733_v22  ;;  %v1905_v9 = vand.u32 4294901760, %v827_v13  ;;  %835 = vmatpush.msrb.mxu0 %v1897_v4 }
  0x7a   :  { %795 = vmatpush.msra.mxu3 %v1696_v45  ;;  %760 = vmatpush.msra.mxu2 %v589_v56  ;;  %v897_v36 = vand.u32 4294901760, %v896_v50 }
  0x7b   :  { %697 = vmatpush.msra.mxu1 %v1746_v53  ;;  %837 = vmatpush.msrb.mxu0 %v1899_v25 }
  0x7c   :  { %797 = vmatpush.msra.mxu3 %v1698_v57  ;;  %764 = vmatpush.msra.mxu2 %v595_v2  ;;  %v1910_v57 = vsub.f32 %v831_v61, %v1897_v4  ;;  %v821_v2 = vld [vmem:[#allocation10 + $0x28] sm:$0xff]  ;;  %v1991_v61 = vand.u32 4294901760, %v819_v35 }
  0x7d   :  { %699 = vmatpush.msra.mxu1 %v1759_v5  ;;  %839 = vmatpush.msrb.mxu0 %v1901_v39  ;;  %v1972_v34 = vand.u32 4294901760, %v821_v2 }
  0x7e   :  { %799 = vmatpush.msra.mxu3 %v1704_v19  ;;  %768 = vmatpush.msra.mxu2 %v601_v20  ;;  %v1913_v19 = vsub.f32 %v830_v62, %v1899_v25  ;;  %v891_v20 = vand.u32 4294901760, %v890_v21 }
  0x7f   :  { %701 = vmatpush.msra.mxu1 %v1772_v28  ;;  %841 = vmatpush.msrb.mxu0 %v1903_v41 }
  0x80   :  { %801 = vmatpush.msra.mxu3 %v1720_v17  ;;  %772 = vmatpush.msra.mxu2 %v607_v31  ;;  %v1925_v17 = vsub.f32 %v827_v13, %v1905_v9  ;;  %v883_v47 = vand.u32 4294901760, %v1913_v19  ;;  %v1966_v31 = vand.u32 4294901760, %v822_v40 }
  0x81   :  { %843 = vmatpush.msrb.mxu0 %v1905_v9 }
  0x82   :  { %803 = vmatpush.msra.mxu3 %v1733_v22  ;;  %v877_v22 = vand.u32 4294901760, %v1910_v57  ;;  %v884_v44 = vsub.f32 %v1913_v19, %v883_v47  ;;  %v901_v49 = vand.u32 4294901760, %v1925_v17 }
  0x83   :  { %845 = vmatpush.msrb.mxu0 %v1907_v43 }
  0x84   :  { %805 = vmatpush.msra.mxu3 %v1746_v53  ;;  %v885_v52 = vand.u32 4294901760, %v884_v44  ;;  %v902_v0 = vsub.f32 %v1925_v17, %v901_v49 }
  0x85   :  { %847 = vmatpush.msrb.mxu0 %v1919_v51 }
  0x86   :  { %807 = vmatpush.msra.mxu3 %v1759_v5  ;;  %v878_v5 = vsub.f32 %v1910_v57, %v877_v22 }
  0x87   :  { %849 = vmatpush.msrb.mxu0 %v1930_v48 }
  0x88   :  { %809 = vmatpush.msra.mxu3 %v1772_v28  ;;  %v1953_v28 = vsub.f32 %v824_v10, %v1930_v48  ;;  %v879_v58 = vand.u32 4294901760, %v878_v5 }
  0x89   :  { %851 = vmatpush.msrb.mxu0 %v1964_v60 }
  0x8a   :  { %880 = vmatpush.msrb.mxu1 %v879_v58  ;;  %v919_v1 = vand.u32 4294901760, %v1953_v28 }
  0x8b   :  { %853 = vmatpush.msrb.mxu0 %v1966_v31 }
  0x8c   :  { %886 = vmatpush.msrb.mxu1 %v885_v52  ;;  %v920_v7 = vsub.f32 %v1953_v28, %v919_v1 }
  0x8d   :  { %855 = vmatpush.msrb.mxu0 %v1972_v34 }
  0x8e   :  { %892 = vmatpush.msrb.mxu1 %v891_v20  ;;  %v921_v44 = vand.u32 4294901760, %v920_v7 }
  0x90   :  { %898 = vmatpush.msrb.mxu1 %v897_v36 }
  0xb9   :  { %v152_v23 = vpop.f32.mrf.mxu0 }
  0xba   :  { %v153_v16 = vadd.f32 %v1203_v15, %v152_v23  ;;  %v1975_v15 = vsub.f32 %v823_v46, %v1964_v60  ;;  %v1979_v23 = vsub.f32 %v822_v40, %v1966_v31 }
  0xbc   :  { %v931_v13 = vand.u32 4294901760, %v1979_v23 }
  0xbd   :  { %v253_v18 = vpop.f32.mrf.mxu1  ;;  %v346_v59 = vpop.f32.mrf.mxu3 }
  0xbe   :  { %v254_v26 = vadd.f32 %v253_v18, %v153_v16  ;;  %v1981_v16 = vand.u32 4294901760, %v820_v33  ;;  %v932_v21 = vsub.f32 %v1979_v23, %v931_v13 }
  0xbf   :  { %v307_v55 = vpop.f32.mrf.mxu2 }
  0xc0   :  { %v308_v27 = vadd.f32 %v307_v55, %v254_v26  ;;  %v914_v26 = vsub.f32 %v1938_v42, %v913_v54  ;;  %v903_v55 = vand.u32 4294901760, %v902_v0  ;;  %v1999_v29 = vsub.f32 %v820_v33, %v1981_v16  ;;  %857 = vmatpush.msrb.mxu0 %v1981_v16 }
  0xc1   :  { %v933_v50 = vand.u32 4294901760, %v932_v21 }
  0xc2   :  { %v347_v30 = vadd.f32 %v346_v59, %v308_v27  ;;  %v925_v27 = vand.u32 4294901760, %v1975_v15  ;;  %v1989_v59 = vsub.f32 %v821_v2, %v1972_v34  ;;  %904 = vmatpush.msrb.mxu1 %v903_v55  ;;  %v915_v24 = vand.u32 4294901760, %v914_v26  ;;  %859 = vmatpush.msrb.mxu0 %v1991_v61  ;;  %v816_v26 = vld [vmem:[#allocation10] sm:$0xff] }
  0xc3   :  { %v943_v46 = vand.u32 4294901760, %v1999_v29 }
  0xc4   :  { %v926_v10 = vsub.f32 %v1975_v15, %v925_v27  ;;  %910 = vmatpush.msrb.mxu1 %v909_v6  ;;  %v864_v6 = vand.u32 4294901760, %v816_v26 }
  0xc5   :  { %v944_v2 = vsub.f32 %v1999_v29, %v943_v46 }
  0xc6   :  { %916 = vmatpush.msrb.mxu1 %v915_v24  ;;  %v966_v24 = vsub.f32 %v816_v26, %v864_v6 }
  0xc7   :  { %v945_v20 = vand.u32 4294901760, %v944_v2 }
  0xc8   :  { %922 = vmatpush.msrb.mxu1 %v921_v44  ;;  %v967_v44 = vand.u32 4294901760, %v966_v24 }
  0xd5   :  { %v415_v45 = vpop.f32.mrf.mxu0 }
  0xd6   :  { %v416_v53 = vadd.f32 %v415_v45, %v347_v30  ;;  %v937_v45 = vand.u32 4294901760, %v1989_v59 }
  0xd8   :  { %v938_v58 = vsub.f32 %v1989_v59, %v937_v45 }
  0xdd   :  { %v452_v56 = vpop.f32.mrf.mxu1 }
  0xde   :  { %v453_v8 = vadd.f32 %v452_v56, %v416_v53  ;;  %v2008_v53 = vsub.f32 %v819_v35, %v1991_v61  ;;  %v927_v56 = vand.u32 4294901760, %v926_v10  ;;  %v817_v35 = vld [vmem:[#allocation10 + $0x8] sm:$0xff] }
  0xe0   :  { %v455_v12 = vmax.f32 %v453_v8, 0.0  ;;  %v949_v52 = vand.u32 4294901760, %v2008_v53  ;;  %928 = vmatpush.msrb.mxu1 %v927_v56  ;;  %v939_v8 = vand.u32 4294901760, %v938_v58 }
  0xe2   :  { %v506_v18 = vand.u32 4294901760, %v455_v12  ;;  %v950_v33 = vsub.f32 %v2008_v53, %v949_v52  ;;  %934 = vmatpush.msrb.mxu1 %v933_v50 }
  0xe4   :  { %v507_v62 = vsub.f32 %v455_v12, %v506_v18  ;;  %612 = vmatmul.f32.vlgmr.msrb.gmra.mxu3 %v506_v18  ;;  %940 = vmatpush.msrb.mxu1 %v939_v8  ;;  %v951_v0 = vand.u32 4294901760, %v950_v33  ;;  %v818_v12 = vld [vmem:[#allocation10 + $0x10] sm:$0xff] }
  0xe5   :  { %1031 = vmatpush.msrb.mxu3 %v1897_v4  ;;  %v860_v32 = vand.u32 4294901760, %v818_v12 }
  0xe6   :  { %666 = vmatmul.f32.vlgmr.msra.gmra.mxu0 %v507_v62  ;;  %v508_v30 = vand.u32 4294901760, %v507_v62  ;;  %946 = vmatpush.msrb.mxu1 %v945_v20 }
  0xe7   :  { %1033 = vmatpush.msrb.mxu3 %v1899_v25  ;;  %v954_v36 = vsub.f32 %v818_v12, %v860_v32  ;;  %861 = vmatpush.msrb.mxu0 %v860_v32 }
  0xe8   :  { %705 = vmatmul.f32.vlgmr.msra.gmra.mxu1 %v508_v30  ;;  %v509_v5 = vsub.f32 %v507_v62, %v508_v30 }
  0xe9   :  { %1035 = vmatpush.msrb.mxu3 %v1901_v39  ;;  %952 = vmatpush.msrb.mxu1 %v951_v0  ;;  %v955_v55 = vand.u32 4294901760, %v954_v36 }
  0xea   :  { %v510_v40 = vand.u32 4294901760, %v509_v5 }
  0xeb   :  { %1037 = vmatpush.msrb.mxu3 %v1903_v41  ;;  %v956_v7 = vsub.f32 %v954_v36, %v955_v55 }
  0xec   :  { %511 = vmatmul.f32.vlgmr.msrb.gmra.mxu2 %v510_v40  ;;  %811 = vmatmul.f32.vlgmr.msra.gmra.mxu3 %v506_v18  ;;  %v968_v40 = vsub.f32 %v966_v24, %v967_v44 }
  0xed   :  { %978 = vmatpush.msrb.mxu2 %v1910_v57  ;;  %1039 = vmatpush.msrb.mxu3 %v1905_v9  ;;  %v957_v10 = vand.u32 4294901760, %v956_v7 }
  0xee   :  { %v969_v56 = vand.u32 4294901760, %v968_v40 }
  0xef   :  { %981 = vmatpush.msrb.mxu2 %v1913_v19  ;;  %1041 = vmatpush.msrb.mxu3 %v1907_v43 }
  0xf0   :  { %958 = vmatpush.msrb.mxu1 %v957_v10 }
  0xf1   :  { %984 = vmatpush.msrb.mxu2 %v1916_v11  ;;  %1043 = vmatpush.msrb.mxu3 %v1919_v51 }
  0xf3   :  { %987 = vmatpush.msrb.mxu2 %v1922_v37  ;;  %1045 = vmatpush.msrb.mxu3 %v1930_v48 }
  0xf4   :  { %774 = vmatmul.f32.vlgmr.msra.gmra.mxu2 %v506_v18  ;;  %v862_v18 = vand.u32 4294901760, %v817_v35 }
  0xf5   :  { %990 = vmatpush.msrb.mxu2 %v1925_v17  ;;  %1047 = vmatpush.msrb.mxu3 %v1964_v60 }
  0xf6   :  { %v960_v62 = vsub.f32 %v817_v35, %v862_v18  ;;  %863 = vmatpush.msrb.mxu0 %v862_v18 }
  0xf7   :  { %993 = vmatpush.msrb.mxu2 %v1928_v38  ;;  %1049 = vmatpush.msrb.mxu3 %v1966_v31 }
  0xf8   :  { %v961_v30 = vand.u32 4294901760, %v960_v62  ;;  %865 = vmatpush.msrb.mxu0 %v864_v6 }
  0xf9   :  { %996 = vmatpush.msrb.mxu2 %v1938_v42  ;;  %1051 = vmatpush.msrb.mxu3 %v1972_v34 }
  0xfa   :  { %1072 = vmatpush.msra.mxu0 %v877_v22  ;;  %v962_v5 = vsub.f32 %v960_v62, %v961_v30 }
  0xfb   :  { %999 = vmatpush.msrb.mxu2 %v1953_v28  ;;  %1053 = vmatpush.msrb.mxu3 %v1981_v16 }
  0xfc   :  { %1076 = vmatpush.msra.mxu0 %v883_v47  ;;  %v963_v21 = vand.u32 4294901760, %v962_v5 }
  0xfd   :  { %1002 = vmatpush.msrb.mxu2 %v1975_v15  ;;  %1055 = vmatpush.msrb.mxu3 %v1991_v61 }
  0xfe   :  { %1080 = vmatpush.msra.mxu0 %v889_v14  ;;  %964 = vmatpush.msrb.mxu1 %v963_v21 }
  0xff   :  { %1005 = vmatpush.msrb.mxu2 %v1979_v23  ;;  %1057 = vmatpush.msrb.mxu3 %v860_v32 }
 0x100   :  { %1084 = vmatpush.msra.mxu0 %v895_v3  ;;  %970 = vmatpush.msrb.mxu1 %v969_v56 }
 0x101   :  { %1008 = vmatpush.msrb.mxu2 %v1989_v59  ;;  %1059 = vmatpush.msrb.mxu3 %v862_v18 }
 0x102   :  { %1139 = vmatpush.msra.mxu1 %v1897_v4  ;;  %1088 = vmatpush.msra.mxu0 %v901_v49  ;;  %v1204_v4 = vld [vmem:[#allocation5 + $0x1] ss:$0 sm:$0xff]  ;;  %v1205_v49 = vld [vmem:[#allocation5 + $0x2] ss:$0 sm:$0xff] }
 0x103   :  { %1011 = vmatpush.msrb.mxu2 %v1999_v29  ;;  %1061 = vmatpush.msrb.mxu3 %v864_v6 }
 0x104   :  { %1141 = vmatpush.msra.mxu1 %v1899_v25  ;;  %1092 = vmatpush.msra.mxu0 %v907_v63 }
 0x105   :  { %1014 = vmatpush.msrb.mxu2 %v2008_v53 }
 0x106   :  { %1143 = vmatpush.msra.mxu1 %v1901_v39  ;;  %1096 = vmatpush.msra.mxu0 %v913_v54 }
 0x107   :  { %1017 = vmatpush.msrb.mxu2 %v954_v36 }
 0x108   :  { %1145 = vmatpush.msra.mxu1 %v1903_v41  ;;  %1100 = vmatpush.msra.mxu0 %v919_v1 }
 0x109   :  { %1020 = vmatpush.msrb.mxu2 %v960_v62 }
 0x10a   :  { %1147 = vmatpush.msra.mxu1 %v1905_v9  ;;  %1104 = vmatpush.msra.mxu0 %v925_v27 }
 0x10b   :  { %1023 = vmatpush.msrb.mxu2 %v966_v24 }
 0x10c   :  { %1149 = vmatpush.msra.mxu1 %v1907_v43  ;;  %1108 = vmatpush.msra.mxu0 %v931_v13 }
 0x10e   :  { %1151 = vmatpush.msra.mxu1 %v1919_v51  ;;  %1112 = vmatpush.msra.mxu0 %v937_v45 }
 0x110   :  { %1153 = vmatpush.msra.mxu1 %v1930_v48  ;;  %1116 = vmatpush.msra.mxu0 %v943_v46 }
 0x112   :  { %1155 = vmatpush.msra.mxu1 %v1964_v60  ;;  %1120 = vmatpush.msra.mxu0 %v949_v52 }
 0x114   :  { %1157 = vmatpush.msra.mxu1 %v1966_v31  ;;  %1124 = vmatpush.msra.mxu0 %v955_v55 }
 0x116   :  { %1159 = vmatpush.msra.mxu1 %v1972_v34  ;;  %1128 = vmatpush.msra.mxu0 %v961_v30 }
 0x118   :  { %1161 = vmatpush.msra.mxu1 %v1981_v16  ;;  %1132 = vmatpush.msra.mxu0 %v967_v44 }
 0x11a   :  { %1163 = vmatpush.msra.mxu1 %v1991_v61 }
 0x11c   :  { %1165 = vmatpush.msra.mxu1 %v860_v32 }
 0x11e   :  { %1167 = vmatpush.msra.mxu1 %v862_v18 }
 0x120   :  { %1169 = vmatpush.msra.mxu1 %v864_v6 }
 0x163   :  { %v667_v43 = vpop.f32.mrf.mxu0 }
 0x165   :  { %v706_v19 = vpop.f32.mrf.mxu1 }
 0x167   :  { %v613_v25 = vpop.f32.mrf.mxu3 }
 0x16f   :  { %v512_v39 = vpop.f32.mrf.mxu2  ;;  %v812_v17 = vpop.f32.mrf.mxu3 }
 0x170   :  { %v513_v41 = vadd.f32 %v1204_v4, %v512_v39 }
 0x172   :  { %v614_v9 = vadd.f32 %v613_v25, %v513_v41 }
 0x174   :  { %v668_v57 = vadd.f32 %v667_v43, %v614_v9 }
 0x176   :  { %v707_v11 = vadd.f32 %v706_v19, %v668_v57 }
 0x177   :  { %v775_v51 = vpop.f32.mrf.mxu2 }
 0x178   :  { %v776_v37 = vadd.f32 %v775_v51, %v707_v11 }
 0x17a   :  { %v813_v38 = vadd.f32 %v812_v17, %v776_v37 }
 0x17c   :  { %v815_v48 = vmax.f32 %v813_v38, 0.0 }
 0x17e   :  { %v866_v22 = vand.u32 4294901760, %v815_v48 }
 0x180   :  { %v867_v47 = vsub.f32 %v815_v48, %v866_v22  ;;  %972 = vmatmul.f32.vlgmr.msrb.gmra.mxu1 %v866_v22 }
 0x182   :  { %1026 = vmatmul.f32.vlgmr.msrb.gmra.mxu2 %v867_v47  ;;  %v868_v14 = vand.u32 4294901760, %v867_v47 }
 0x184   :  { %1065 = vmatmul.f32.vlgmr.msrb.gmra.mxu3 %v868_v14  ;;  %v869_v3 = vsub.f32 %v867_v47, %v868_v14 }
 0x186   :  { %v870_v42 = vand.u32 4294901760, %v869_v3 }
 0x188   :  { %871 = vmatmul.f32.vlgmr.msrb.gmra.mxu0 %v870_v42  ;;  %1171 = vmatmul.f32.vlgmr.msra.gmra.mxu1 %v866_v22 }
 0x190   :  { %1134 = vmatmul.f32.vlgmr.msra.gmra.mxu0 %v866_v22 }
 0x1fd   :  { %v973_v63 = vpop.f32.mrf.mxu1 }
 0x205   :  { %v872_v28 = vpop.f32.mrf.mxu0  ;;  %v1027_v31 = vpop.f32.mrf.mxu2 }
 0x206   :  { %v873_v54 = vadd.f32 %v1205_v49, %v872_v28  ;;  %v1172_v27 = vpop.f32.mrf.mxu1 }
 0x207   :  { %v1066_v34 = vpop.f32.mrf.mxu3 }
 0x208   :  { %v974_v60 = vadd.f32 %v973_v63, %v873_v54 }
 0x20a   :  { %v1028_v1 = vadd.f32 %v1027_v31, %v974_v60 }
 0x20c   :  { %v1067_v15 = vadd.f32 %v1066_v34, %v1028_v1 }
 0x20d   :  { %v1135_v23 = vpop.f32.mrf.mxu0 }
 0x20e   :  { %v1136_v16 = vadd.f32 %v1135_v23, %v1067_v15 }
 0x210   :  { %v1173_v59 = vadd.f32 %v1172_v27, %v1136_v16 }
 0x212   :  { %1175 = vst [vmem:[#allocation11] sm:$0xff] %v1173_v59 }
 0x213   :  { %1186 = dma.vmem_to_hbm [thread:$0]  %s1182_s4, 128, %s1184_s19, [#allocation4]  }
 0x214   :  { %1356 = dma.done.wait [#allocation4], 128  }
 0x215   :  { %1357 = vsyncadd [#allocation4], 4294967168 }
 0x216   :  { %1191 = vsyncpa [#allocation3], 1 }
 0x217   :  { %1192 = vsyncpa [#allocation6], 1 }
 0x218   :  { %1193 = vsyncpa [#allocation9], 1 }
 0x219   :  { %1194 = vsyncpa [#allocation4], 1 }

</bundles_post_ra>
